<compile_context>
chip_gen: v5e
topology: v5e:2x2
jax: 0.10.0
libtpu: 0.0.40
codegen_flags: <defaults>
</compile_context>

<pallas_src>
import jax
import jax.numpy as jnp
from jax.experimental import pallas as pl
from jax.experimental.pallas import tpu as pltpu

# ----- small "bert"-shaped config (lane-dense hidden sizes) -----------------
VOCAB = 100
TYPE_VOCAB = 2
MAX_POS = 32
HIDDEN = 128
N_LAYERS = 2
N_HEADS = 2
HEAD_DIM = HIDDEN // N_HEADS
INTERMEDIATE = 256
NUM_LABELS = 3
CLS_PAD = 128            # lane-padded classifier output width
LN_EPS = 1e-12


def _layernorm(x, g, b):
    """LayerNorm over the lane (hidden) axis, statistics in f32."""
    mean = jnp.mean(x, axis=-1, keepdims=True)
    var = jnp.mean((x - mean) ** 2, axis=-1, keepdims=True)
    return (x - mean) * jax.lax.rsqrt(var + LN_EPS) * g + b


def _bert_classifier_kernel(
    x_emb_ref, mask_ref,
    emb_g_ref, emb_b_ref,
    wqkv_ref, bqkv_ref, wo_ref, bo_ref, ln1_g_ref, ln1_b_ref,
    wi_ref, bi_ref, wout_ref, bout_ref, ln2_g_ref, ln2_b_ref,
    pool_w_ref, pool_b_ref, cls_w_ref, cls_b_ref,
    o_ref,
    x_res,
):
    """One grid step = (one batch element, one encoder layer)."""
    l = pl.program_id(1)
    scale = 1.0 / (HEAD_DIM ** 0.5)

    # ---- layer 0: embedding LayerNorm seeds the residual stream ------------
    @pl.when(l == 0)
    def _():
        x_res[...] = _layernorm(x_emb_ref[0].astype(jnp.float32),
                                emb_g_ref[...], emb_b_ref[...])

    x = x_res[...]                                    # (S, H) f32 residual
    x_bf = x.astype(jnp.bfloat16)                     # hoisted: QKV + FFN-in reuse

    mask_add = mask_ref[...]                          # (1, 1, S) additive mask

    # ---- per-head QKV projections (leading-axis weight split, no lane slicing)
    def proj(t):
        heads = []
        for h in range(N_HEADS):
            w = wqkv_ref[0, t, h]                     # (H, Dh) bf16
            b = bqkv_ref[0, t, h]                     # (1, Dh) f32
            y = jnp.dot(x_bf, w, preferred_element_type=jnp.float32) + b
            heads.append(y.astype(jnp.bfloat16))      # bf16 MXU inputs for attn
        return jnp.stack(heads, axis=0)               # (NH, S, Dh)

    qh, kh, vh = proj(0), proj(1), proj(2)

    # ---- batched multi-head attention (bf16 MXU inputs, f32 accumulate) ----
    s = jnp.einsum('hqd,hkd->hqk', qh, kh,
                   preferred_element_type=jnp.float32) * scale      # (NH, S, S)
    s = s + mask_add
    s = s - jnp.max(s, axis=-1, keepdims=True)
    p = jnp.exp(s)
    p = p * pl.reciprocal(jnp.sum(p, axis=-1, keepdims=True), approx=True)
    ctx = jnp.einsum('hqk,hkd->hqd', p.astype(jnp.bfloat16), vh,
                     preferred_element_type=jnp.float32)            # (NH, S, Dh)
    # keep context in vregs: lane-concat heads straight into the output dense
    ctx = jnp.concatenate([ctx[h] for h in range(N_HEADS)], axis=-1)  # (S, H)

    # ---- attention output dense + residual + LayerNorm (dropout: eval) -----
    attn = jnp.dot(ctx.astype(jnp.bfloat16), wo_ref[0],
                   preferred_element_type=jnp.float32) + bo_ref[0]
    x = _layernorm(x + attn, ln1_g_ref[0], ln1_b_ref[0])

    # ---- FFN + residual + LayerNorm (dropout: eval) -------------------------
    # TODO(synk): HF BERT uses exact (erf) GELU; tanh approximation used here.
    h1 = jax.nn.gelu(jnp.dot(x.astype(jnp.bfloat16), wi_ref[0],
                             preferred_element_type=jnp.float32) + bi_ref[0],
                     approximate=True)
    h2 = jnp.dot(h1.astype(jnp.bfloat16), wout_ref[0],
                 preferred_element_type=jnp.float32) + bout_ref[0]
    x = _layernorm(x + h2, ln2_g_ref[0], ln2_b_ref[0])
    x_res[...] = x

    # ---- last layer: pooler on the [CLS] row + classifier head --------------
    @pl.when(l == pl.num_programs(1) - 1)
    def _():
        cls = x[0:1, :]                                # (1, H): row 0, no gather
        pooled = jnp.tanh(
            jnp.dot(cls, pool_w_ref[...], preferred_element_type=jnp.float32)
            + pool_b_ref[...])
        logits = jnp.dot(pooled, cls_w_ref[...],
                         preferred_element_type=jnp.float32) + cls_b_ref[...]
        o_ref[...] = logits.reshape(1, 1, CLS_PAD)     # 128-lane-padded store


# --------------------------- parameter init ----------------------------------
def init_params(key):
    def lin(k, fan_in, fan_out):
        return (0.02 * jax.random.normal(k, (fan_in, fan_out), jnp.float32),
                jnp.zeros((fan_out,), jnp.float32))

    keys = jax.random.split(key, 5 + N_LAYERS)
    params = {
        "word_emb": 0.02 * jax.random.normal(keys[0], (VOCAB, HIDDEN), jnp.float32),
        "pos_emb": 0.02 * jax.random.normal(keys[1], (MAX_POS, HIDDEN), jnp.float32),
        "type_emb": 0.02 * jax.random.normal(keys[2], (TYPE_VOCAB, HIDDEN), jnp.float32),
        "emb_ln_g": jnp.ones((1, HIDDEN), jnp.float32),
        "emb_ln_b": jnp.zeros((1, HIDDEN), jnp.float32),
    }

    def per_head(w):  # (H, H) -> (N_HEADS, H, HEAD_DIM): leading-axis head split
        return w.reshape(HIDDEN, N_HEADS, HEAD_DIM).transpose(1, 0, 2)

    wqkv, bqkv, wo, bo, wi, bi, wout, bout = ([] for _ in range(8))
    ln1_g, ln1_b, ln2_g, ln2_b = ([] for _ in range(4))
    for li in range(N_LAYERS):
        lk = jax.random.split(keys[3 + li], 6)
        wq, _ = lin(lk[0], HIDDEN, HIDDEN)
        wk, _ = lin(lk[1], HIDDEN, HIDDEN)
        wv, _ = lin(lk[2], HIDDEN, HIDDEN)
        w_o, b_o = lin(lk[3], HIDDEN, HIDDEN)
        w_i, b_i = lin(lk[4], HIDDEN, INTERMEDIATE)
        w_f, b_f = lin(lk[5], INTERMEDIATE, HIDDEN)

        wqkv.append(jnp.stack([per_head(wq), per_head(wk), per_head(wv)], axis=0))
        bqkv.append(jnp.zeros((3, N_HEADS, 1, HEAD_DIM), jnp.float32))
        wo.append(w_o);      bo.append(b_o.reshape(1, HIDDEN))
        wi.append(w_i);      bi.append(b_i.reshape(1, INTERMEDIATE))
        wout.append(w_f);    bout.append(b_f.reshape(1, HIDDEN))
        ln1_g.append(jnp.ones((1, HIDDEN), jnp.float32))
        ln1_b.append(jnp.zeros((1, HIDDEN), jnp.float32))
        ln2_g.append(jnp.ones((1, HIDDEN), jnp.float32))
        ln2_b.append(jnp.zeros((1, HIDDEN), jnp.float32))

    stack = lambda xs: jnp.stack(xs, axis=0)
    params.update({
        # big matmul weights bf16 (MXU-native); biases / LN params f32
        "wqkv": stack(wqkv).astype(jnp.bfloat16), "bqkv": stack(bqkv),
        "wo": stack(wo).astype(jnp.bfloat16),     "bo": stack(bo),
        "ln1_g": stack(ln1_g), "ln1_b": stack(ln1_b),
        "wi": stack(wi).astype(jnp.bfloat16),     "bi": stack(bi),
        "wout": stack(wout).astype(jnp.bfloat16), "bout": stack(bout),
        "ln2_g": stack(ln2_g), "ln2_b": stack(ln2_b),
    })

    pw, pb = lin(keys[3 + N_LAYERS], HIDDEN, HIDDEN)
    cw, cb = lin(keys[4 + N_LAYERS], HIDDEN, NUM_LABELS)
    params["pooler_w"] = pw                           # tiny heads stay f32
    params["pooler_b"] = pb.reshape(1, HIDDEN)
    # classifier weight padded to 128 lanes; sliced back in the wrapper
    params["cls_w"] = jnp.pad(cw, ((0, 0), (0, CLS_PAD - NUM_LABELS)))
    params["cls_b"] = jnp.pad(cb.reshape(1, NUM_LABELS),
                              ((0, 0), (0, CLS_PAD - NUM_LABELS)))
    return params


# --------------------------- forward (one pallas_call) -----------------------
def classifier_forward(params, input_ids, attention_mask, token_type_ids):
    B, S = input_ids.shape

    # Embedding gathers are XLA glue (data-dependent table lookup).
    x_emb = (params["word_emb"][input_ids]
             + params["pos_emb"][:S][None, :, :]
             + params["type_emb"][token_type_ids])                    # (B, S, H)
    # BERT-style additive attention mask, shaped (B, 1, S).
    mask_add = ((1.0 - attention_mask.astype(jnp.float32)) * -10000.0
                ).reshape(B, 1, S)

    def batch_spec(a):
        n = a.ndim - 1
        return pl.BlockSpec((1,) + a.shape[1:],
                            lambda b, l, _n=n: (b,) + (0,) * _n)

    def layer_spec(a):
        n = a.ndim - 1
        return pl.BlockSpec((1,) + a.shape[1:],
                            lambda b, l, _n=n: (l,) + (0,) * _n)

    def const_spec(a):
        n = a.ndim
        return pl.BlockSpec(a.shape, lambda b, l, _n=n: (0,) * _n)

    ins = [x_emb, mask_add, params["emb_ln_g"], params["emb_ln_b"]]
    in_specs = [batch_spec(x_emb), batch_spec(mask_add),
                const_spec(params["emb_ln_g"]), const_spec(params["emb_ln_b"])]

    for name in ["wqkv", "bqkv", "wo", "bo", "ln1_g", "ln1_b",
                 "wi", "bi", "wout", "bout", "ln2_g", "ln2_b"]:
        ins.append(params[name])
        in_specs.append(layer_spec(params[name]))      # streamed per layer

    for name in ["pooler_w", "pooler_b", "cls_w", "cls_b"]:
        ins.append(params[name])
        in_specs.append(const_spec(params[name]))

    out = pl.pallas_call(
        _bert_classifier_kernel,
        out_shape=jax.ShapeDtypeStruct((B, 1, CLS_PAD), jnp.float32),
        grid=(B, N_LAYERS),
        in_specs=in_specs,
        out_specs=pl.BlockSpec((1, 1, CLS_PAD), lambda b, l: (b, 0, 0)),
        scratch_shapes=[pltpu.VMEM((S, HIDDEN), jnp.float32)],   # residual carry
        compiler_params=pltpu.CompilerParams(
            dimension_semantics=("parallel", "arbitrary")),
    )(*ins)

    return out[:, 0, :NUM_LABELS]


if __name__ == "__main__":
    key = jax.random.PRNGKey(0)
    pkey, ikey = jax.random.split(key)

    B, S = 2, 8
    params = init_params(pkey)

    input_ids = jax.random.randint(ikey, (B, S), 0, VOCAB, dtype=jnp.int32)
    attention_mask = jnp.array([[1, 1, 1, 1, 1, 1, 1, 1],
                                [1, 1, 1, 1, 1, 1, 0, 0]], dtype=jnp.int32)
    token_type_ids = jnp.array([[0, 0, 0, 0, 1, 1, 1, 1],
                                [0, 0, 0, 1, 1, 1, 0, 0]], dtype=jnp.int32)

    logits = jax.jit(classifier_forward)(params, input_ids, attention_mask,
                                         token_type_ids)
    jax.block_until_ready(logits)
    assert logits.shape == (B, NUM_LABELS)
    print("KERNEL_OK")
</pallas_src>

<mosaic_0001>
module attributes {stable_mosaic.version = 11 : i64} {
  func.func @_bert_classifier_kernel(%arg0: i32, %arg1: i32, %arg2: memref<1x8x128xf32, #tpu.memory_space<vmem>>, %arg3: memref<1x1x8xf32, #tpu.memory_space<vmem>>, %arg4: memref<1x128xf32, #tpu.memory_space<vmem>>, %arg5: memref<1x128xf32, #tpu.memory_space<vmem>>, %arg6: memref<1x3x2x128x64xbf16, #tpu.memory_space<vmem>>, %arg7: memref<1x3x2x1x64xf32, #tpu.memory_space<vmem>>, %arg8: memref<1x128x128xbf16, #tpu.memory_space<vmem>>, %arg9: memref<1x1x128xf32, #tpu.memory_space<vmem>>, %arg10: memref<1x1x128xf32, #tpu.memory_space<vmem>>, %arg11: memref<1x1x128xf32, #tpu.memory_space<vmem>>, %arg12: memref<1x128x256xbf16, #tpu.memory_space<vmem>>, %arg13: memref<1x1x256xf32, #tpu.memory_space<vmem>>, %arg14: memref<1x256x128xbf16, #tpu.memory_space<vmem>>, %arg15: memref<1x1x128xf32, #tpu.memory_space<vmem>>, %arg16: memref<1x1x128xf32, #tpu.memory_space<vmem>>, %arg17: memref<1x1x128xf32, #tpu.memory_space<vmem>>, %arg18: memref<128x128xf32, #tpu.memory_space<vmem>>, %arg19: memref<1x128xf32, #tpu.memory_space<vmem>>, %arg20: memref<128x128xf32, #tpu.memory_space<vmem>>, %arg21: memref<1x128xf32, #tpu.memory_space<vmem>>, %arg22: memref<1x1x128xf32, #tpu.memory_space<vmem>>, %arg23: memref<8x128xf32, #tpu.memory_space<vmem>>) attributes {dimension_semantics = [#tpu.dimension_semantics<parallel>, #tpu.dimension_semantics<arbitrary>], iteration_bounds = array<i64: 2, 2>, scalar_prefetch = 0 : i64, scratch_operands = 1 : i64, tpu.core_type = #tpu.core_type<tc>, window_params = [{transform_indices = @transform_0, window_bounds = array<i64: 1, 8, 128>}, {transform_indices = @transform_1, window_bounds = array<i64: 1, 1, 8>}, {pipeline_mode = #tpu.pipeline_mode<synchronous>, transform_indices = @transform_2, window_bounds = array<i64: 1, 128>}, {pipeline_mode = #tpu.pipeline_mode<synchronous>, transform_indices = @transform_3, window_bounds = array<i64: 1, 128>}, {transform_indices = @transform_4, window_bounds = array<i64: 1, 3, 2, 128, 64>}, {transform_indices = @transform_5, window_bounds = array<i64: 1, 3, 2, 1, 64>}, {transform_indices = @transform_6, window_bounds = array<i64: 1, 128, 128>}, {transform_indices = @transform_7, window_bounds = array<i64: 1, 1, 128>}, {transform_indices = @transform_8, window_bounds = array<i64: 1, 1, 128>}, {transform_indices = @transform_9, window_bounds = array<i64: 1, 1, 128>}, {transform_indices = @transform_10, window_bounds = array<i64: 1, 128, 256>}, {transform_indices = @transform_11, window_bounds = array<i64: 1, 1, 256>}, {transform_indices = @transform_12, window_bounds = array<i64: 1, 256, 128>}, {transform_indices = @transform_13, window_bounds = array<i64: 1, 1, 128>}, {transform_indices = @transform_14, window_bounds = array<i64: 1, 1, 128>}, {transform_indices = @transform_15, window_bounds = array<i64: 1, 1, 128>}, {pipeline_mode = #tpu.pipeline_mode<synchronous>, transform_indices = @transform_16, window_bounds = array<i64: 128, 128>}, {pipeline_mode = #tpu.pipeline_mode<synchronous>, transform_indices = @transform_17, window_bounds = array<i64: 1, 128>}, {pipeline_mode = #tpu.pipeline_mode<synchronous>, transform_indices = @transform_18, window_bounds = array<i64: 128, 128>}, {pipeline_mode = #tpu.pipeline_mode<synchronous>, transform_indices = @transform_19, window_bounds = array<i64: 1, 128>}, {transform_indices = @transform_20, window_bounds = array<i64: 1, 1, 128>}]} {
    %c0_i32 = arith.constant 0 : i32
    %0 = arith.cmpi eq, %arg1, %c0_i32 : i32
    %1 = arith.extui %0 : i1 to i32
    %c0_i32_0 = arith.constant 0 : i32
    %2 = arith.cmpi ne, %1, %c0_i32_0 : i32
    scf.if %2 {
      %c0_123 = arith.constant 0 : index
      %c0_124 = arith.constant 0 : index
      %c0_125 = arith.constant 0 : index
      %180 = vector.load %arg2[%c0_123, %c0_124, %c0_125] : memref<1x8x128xf32, #tpu.memory_space<vmem>>, vector<1x8x128xf32>
      %181 = vector.shape_cast %180 : vector<1x8x128xf32> to vector<8x128xf32>
      %c0_126 = arith.constant 0 : index
      %c0_127 = arith.constant 0 : index
      %182 = vector.load %arg4[%c0_126, %c0_127] : memref<1x128xf32, #tpu.memory_space<vmem>>, vector<1x128xf32>
      %c0_128 = arith.constant 0 : index
      %c0_129 = arith.constant 0 : index
      %183 = vector.load %arg5[%c0_128, %c0_129] : memref<1x128xf32, #tpu.memory_space<vmem>>, vector<1x128xf32>
      %cst_130 = arith.constant dense<0.000000e+00> : vector<8xf32>
      %184 = vector.multi_reduction <add>, %181, %cst_130 [1] : vector<8x128xf32> to vector<8xf32>
      %185 = vector.shape_cast %184 : vector<8xf32> to vector<8x1xf32>
      %cst_131 = arith.constant 1.280000e+02 : f32
      %186 = vector.broadcast %cst_131 : f32 to vector<8x1xf32>
      %187 = arith.divf %185, %186 : vector<8x1xf32>
      %188 = vector.broadcast %187 : vector<8x1xf32> to vector<8x128xf32>
      %189 = arith.subf %181, %188 : vector<8x128xf32>
      %190 = arith.mulf %189, %189 : vector<8x128xf32>
      %cst_132 = arith.constant dense<0.000000e+00> : vector<8xf32>
      %191 = vector.multi_reduction <add>, %190, %cst_132 [1] : vector<8x128xf32> to vector<8xf32>
      %192 = vector.shape_cast %191 : vector<8xf32> to vector<8x1xf32>
      %cst_133 = arith.constant 1.280000e+02 : f32
      %193 = vector.broadcast %cst_133 : f32 to vector<8x1xf32>
      %194 = arith.divf %192, %193 : vector<8x1xf32>
      %195 = vector.broadcast %187 : vector<8x1xf32> to vector<8x128xf32>
      %196 = arith.subf %181, %195 : vector<8x128xf32>
      %cst_134 = arith.constant 9.99999996E-13 : f32
      %197 = vector.broadcast %cst_134 : f32 to vector<8x1xf32>
      %198 = arith.addf %194, %197 : vector<8x1xf32>
      %199 = math.rsqrt %198 : vector<8x1xf32>
      %200 = vector.broadcast %199 : vector<8x1xf32> to vector<8x128xf32>
      %201 = arith.mulf %196, %200 : vector<8x128xf32>
      %202 = vector.broadcast %182 : vector<1x128xf32> to vector<8x128xf32>
      %203 = arith.mulf %201, %202 : vector<8x128xf32>
      %204 = vector.broadcast %183 : vector<1x128xf32> to vector<8x128xf32>
      %205 = arith.addf %203, %204 : vector<8x128xf32>
      %c0_135 = arith.constant 0 : index
      %c0_136 = arith.constant 0 : index
      %206 = vector.load %arg23[%c0_135, %c0_136] : memref<8x128xf32, #tpu.memory_space<vmem>>, vector<8x128xf32>
      tpu.vector_store %arg23[%c0_135, %c0_136], %205 {strides = array<i32>} : memref<8x128xf32, #tpu.memory_space<vmem>>, vector<8x128xf32>,
    } else {
    }
    %c0 = arith.constant 0 : index
    %c0_1 = arith.constant 0 : index
    %3 = vector.load %arg23[%c0, %c0_1] : memref<8x128xf32, #tpu.memory_space<vmem>>, vector<8x128xf32>
    %4 = arith.truncf %3 : vector<8x128xf32> to vector<8x128xbf16>
    %c0_2 = arith.constant 0 : index
    %c0_3 = arith.constant 0 : index
    %c0_4 = arith.constant 0 : index
    %5 = vector.load %arg3[%c0_2, %c0_3, %c0_4] : memref<1x1x8xf32, #tpu.memory_space<vmem>>, vector<1x1x8xf32>
    %c0_5 = arith.constant 0 : index
    %c0_6 = arith.constant 0 : index
    %c0_7 = arith.constant 0 : index
    %c0_8 = arith.constant 0 : index
    %c0_9 = arith.constant 0 : index
    %6 = vector.load %arg6[%c0_5, %c0_6, %c0_7, %c0_8, %c0_9] : memref<1x3x2x128x64xbf16, #tpu.memory_space<vmem>>, vector<1x1x1x128x64xbf16>
    %7 = vector.shape_cast %6 : vector<1x1x1x128x64xbf16> to vector<128x64xbf16>
    %c0_10 = arith.constant 0 : index
    %c0_11 = arith.constant 0 : index
    %c0_12 = arith.constant 0 : index
    %c0_13 = arith.constant 0 : index
    %c0_14 = arith.constant 0 : index
    %8 = vector.load %arg7[%c0_10, %c0_11, %c0_12, %c0_13, %c0_14] : memref<1x3x2x1x64xf32, #tpu.memory_space<vmem>>, vector<1x1x1x1x64xf32>
    %9 = vector.shape_cast %8 : vector<1x1x1x1x64xf32> to vector<1x64xf32>
    %cst = arith.constant dense<0.000000e+00> : vector<8x64xf32>
    %10 = tpu.matmul %4, %7, %cst {dimension_numbers = #tpu.dot_dimension_numbers<[1], [0], [0], [1], [0, 0, 1, 1], [], []>} : vector<8x128xbf16>, vector<128x64xbf16>, vector<8x64xf32> -> vector<8x64xf32>
    %11 = vector.broadcast %9 : vector<1x64xf32> to vector<8x64xf32>
    %12 = arith.addf %10, %11 : vector<8x64xf32>
    %13 = arith.truncf %12 : vector<8x64xf32> to vector<8x64xbf16>
    %c0_15 = arith.constant 0 : index
    %c0_16 = arith.constant 0 : index
    %c1 = arith.constant 1 : index
    %c0_17 = arith.constant 0 : index
    %c0_18 = arith.constant 0 : index
    %14 = vector.load %arg6[%c0_15, %c0_16, %c1, %c0_17, %c0_18] : memref<1x3x2x128x64xbf16, #tpu.memory_space<vmem>>, vector<1x1x1x128x64xbf16>
    %15 = vector.shape_cast %14 : vector<1x1x1x128x64xbf16> to vector<128x64xbf16>
    %c0_19 = arith.constant 0 : index
    %c0_20 = arith.constant 0 : index
    %c1_21 = arith.constant 1 : index
    %c0_22 = arith.constant 0 : index
    %c0_23 = arith.constant 0 : index
    %16 = vector.load %arg7[%c0_19, %c0_20, %c1_21, %c0_22, %c0_23] : memref<1x3x2x1x64xf32, #tpu.memory_space<vmem>>, vector<1x1x1x1x64xf32>
    %17 = vector.shape_cast %16 : vector<1x1x1x1x64xf32> to vector<1x64xf32>
    %cst_24 = arith.constant dense<0.000000e+00> : vector<8x64xf32>
    %18 = tpu.matmul %4, %15, %cst_24 {dimension_numbers = #tpu.dot_dimension_numbers<[1], [0], [0], [1], [0, 0, 1, 1], [], []>} : vector<8x128xbf16>, vector<128x64xbf16>, vector<8x64xf32> -> vector<8x64xf32>
    %19 = vector.broadcast %17 : vector<1x64xf32> to vector<8x64xf32>
    %20 = arith.addf %18, %19 : vector<8x64xf32>
    %21 = arith.truncf %20 : vector<8x64xf32> to vector<8x64xbf16>
    %22 = vector.shape_cast %13 : vector<8x64xbf16> to vector<1x8x64xbf16>
    %23 = vector.shape_cast %21 : vector<8x64xbf16> to vector<1x8x64xbf16>
    %24 = tpu.concatenate %22, %23 in 0 : vector<1x8x64xbf16>, vector<1x8x64xbf16> -> vector<2x8x64xbf16>
    %c0_25 = arith.constant 0 : index
    %c1_26 = arith.constant 1 : index
    %c0_27 = arith.constant 0 : index
    %c0_28 = arith.constant 0 : index
    %c0_29 = arith.constant 0 : index
    %25 = vector.load %arg6[%c0_25, %c1_26, %c0_27, %c0_28, %c0_29] : memref<1x3x2x128x64xbf16, #tpu.memory_space<vmem>>, vector<1x1x1x128x64xbf16>
    %26 = vector.shape_cast %25 : vector<1x1x1x128x64xbf16> to vector<128x64xbf16>
    %c0_30 = arith.constant 0 : index
    %c1_31 = arith.constant 1 : index
    %c0_32 = arith.constant 0 : index
    %c0_33 = arith.constant 0 : index
    %c0_34 = arith.constant 0 : index
    %27 = vector.load %arg7[%c0_30, %c1_31, %c0_32, %c0_33, %c0_34] : memref<1x3x2x1x64xf32, #tpu.memory_space<vmem>>, vector<1x1x1x1x64xf32>
    %28 = vector.shape_cast %27 : vector<1x1x1x1x64xf32> to vector<1x64xf32>
    %cst_35 = arith.constant dense<0.000000e+00> : vector<8x64xf32>
    %29 = tpu.matmul %4, %26, %cst_35 {dimension_numbers = #tpu.dot_dimension_numbers<[1], [0], [0], [1], [0, 0, 1, 1], [], []>} : vector<8x128xbf16>, vector<128x64xbf16>, vector<8x64xf32> -> vector<8x64xf32>
    %30 = vector.broadcast %28 : vector<1x64xf32> to vector<8x64xf32>
    %31 = arith.addf %29, %30 : vector<8x64xf32>
    %32 = arith.truncf %31 : vector<8x64xf32> to vector<8x64xbf16>
    %c0_36 = arith.constant 0 : index
    %c1_37 = arith.constant 1 : index
    %c1_38 = arith.constant 1 : index
    %c0_39 = arith.constant 0 : index
    %c0_40 = arith.constant 0 : index
    %33 = vector.load %arg6[%c0_36, %c1_37, %c1_38, %c0_39, %c0_40] : memref<1x3x2x128x64xbf16, #tpu.memory_space<vmem>>, vector<1x1x1x128x64xbf16>
    %34 = vector.shape_cast %33 : vector<1x1x1x128x64xbf16> to vector<128x64xbf16>
    %c0_41 = arith.constant 0 : index
    %c1_42 = arith.constant 1 : index
    %c1_43 = arith.constant 1 : index
    %c0_44 = arith.constant 0 : index
    %c0_45 = arith.constant 0 : index
    %35 = vector.load %arg7[%c0_41, %c1_42, %c1_43, %c0_44, %c0_45] : memref<1x3x2x1x64xf32, #tpu.memory_space<vmem>>, vector<1x1x1x1x64xf32>
    %36 = vector.shape_cast %35 : vector<1x1x1x1x64xf32> to vector<1x64xf32>
    %cst_46 = arith.constant dense<0.000000e+00> : vector<8x64xf32>
    %37 = tpu.matmul %4, %34, %cst_46 {dimension_numbers = #tpu.dot_dimension_numbers<[1], [0], [0], [1], [0, 0, 1, 1], [], []>} : vector<8x128xbf16>, vector<128x64xbf16>, vector<8x64xf32> -> vector<8x64xf32>
    %38 = vector.broadcast %36 : vector<1x64xf32> to vector<8x64xf32>
    %39 = arith.addf %37, %38 : vector<8x64xf32>
    %40 = arith.truncf %39 : vector<8x64xf32> to vector<8x64xbf16>
    %41 = vector.shape_cast %32 : vector<8x64xbf16> to vector<1x8x64xbf16>
    %42 = vector.shape_cast %40 : vector<8x64xbf16> to vector<1x8x64xbf16>
    %43 = tpu.concatenate %41, %42 in 0 : vector<1x8x64xbf16>, vector<1x8x64xbf16> -> vector<2x8x64xbf16>
    %c0_47 = arith.constant 0 : index
    %c2 = arith.constant 2 : index
    %c0_48 = arith.constant 0 : index
    %c0_49 = arith.constant 0 : index
    %c0_50 = arith.constant 0 : index
    %44 = vector.load %arg6[%c0_47, %c2, %c0_48, %c0_49, %c0_50] : memref<1x3x2x128x64xbf16, #tpu.memory_space<vmem>>, vector<1x1x1x128x64xbf16>
    %45 = vector.shape_cast %44 : vector<1x1x1x128x64xbf16> to vector<128x64xbf16>
    %c0_51 = arith.constant 0 : index
    %c2_52 = arith.constant 2 : index
    %c0_53 = arith.constant 0 : index
    %c0_54 = arith.constant 0 : index
    %c0_55 = arith.constant 0 : index
    %46 = vector.load %arg7[%c0_51, %c2_52, %c0_53, %c0_54, %c0_55] : memref<1x3x2x1x64xf32, #tpu.memory_space<vmem>>, vector<1x1x1x1x64xf32>
    %47 = vector.shape_cast %46 : vector<1x1x1x1x64xf32> to vector<1x64xf32>
    %cst_56 = arith.constant dense<0.000000e+00> : vector<8x64xf32>
    %48 = tpu.matmul %4, %45, %cst_56 {dimension_numbers = #tpu.dot_dimension_numbers<[1], [0], [0], [1], [0, 0, 1, 1], [], []>} : vector<8x128xbf16>, vector<128x64xbf16>, vector<8x64xf32> -> vector<8x64xf32>
    %49 = vector.broadcast %47 : vector<1x64xf32> to vector<8x64xf32>
    %50 = arith.addf %48, %49 : vector<8x64xf32>
    %51 = arith.truncf %50 : vector<8x64xf32> to vector<8x64xbf16>
    %c0_57 = arith.constant 0 : index
    %c2_58 = arith.constant 2 : index
    %c1_59 = arith.constant 1 : index
    %c0_60 = arith.constant 0 : index
    %c0_61 = arith.constant 0 : index
    %52 = vector.load %arg6[%c0_57, %c2_58, %c1_59, %c0_60, %c0_61] : memref<1x3x2x128x64xbf16, #tpu.memory_space<vmem>>, vector<1x1x1x128x64xbf16>
    %53 = vector.shape_cast %52 : vector<1x1x1x128x64xbf16> to vector<128x64xbf16>
    %c0_62 = arith.constant 0 : index
    %c2_63 = arith.constant 2 : index
    %c1_64 = arith.constant 1 : index
    %c0_65 = arith.constant 0 : index
    %c0_66 = arith.constant 0 : index
    %54 = vector.load %arg7[%c0_62, %c2_63, %c1_64, %c0_65, %c0_66] : memref<1x3x2x1x64xf32, #tpu.memory_space<vmem>>, vector<1x1x1x1x64xf32>
    %55 = vector.shape_cast %54 : vector<1x1x1x1x64xf32> to vector<1x64xf32>
    %cst_67 = arith.constant dense<0.000000e+00> : vector<8x64xf32>
    %56 = tpu.matmul %4, %53, %cst_67 {dimension_numbers = #tpu.dot_dimension_numbers<[1], [0], [0], [1], [0, 0, 1, 1], [], []>} : vector<8x128xbf16>, vector<128x64xbf16>, vector<8x64xf32> -> vector<8x64xf32>
    %57 = vector.broadcast %55 : vector<1x64xf32> to vector<8x64xf32>
    %58 = arith.addf %56, %57 : vector<8x64xf32>
    %59 = arith.truncf %58 : vector<8x64xf32> to vector<8x64xbf16>
    %60 = vector.shape_cast %51 : vector<8x64xbf16> to vector<1x8x64xbf16>
    %61 = vector.shape_cast %59 : vector<8x64xbf16> to vector<1x8x64xbf16>
    %62 = tpu.concatenate %60, %61 in 0 : vector<1x8x64xbf16>, vector<1x8x64xbf16> -> vector<2x8x64xbf16>
    "tpu.trace_start"() <{level = 10 : i32, message = "hqd,hkd->hqk"}> : () -> ()
    %cst_68 = arith.constant dense<0.000000e+00> : vector<2x8x8xf32>
    %63 = tpu.matmul %24, %43, %cst_68 {dimension_numbers = #tpu.dot_dimension_numbers<[2], [2], [1], [1], [0, 0, 0, 1, 1, 1], [0], [0]>} : vector<2x8x64xbf16>, vector<2x8x64xbf16>, vector<2x8x8xf32> -> vector<2x8x8xf32>
    "tpu.trace_stop"() : () -> ()
    %cst_69 = arith.constant 1.250000e-01 : f32
    %64 = vector.broadcast %cst_69 : f32 to vector<2x8x8xf32>
    %65 = arith.mulf %63, %64 : vector<2x8x8xf32>
    %66 = vector.broadcast %5 : vector<1x1x8xf32> to vector<2x8x8xf32>
    %67 = arith.addf %65, %66 : vector<2x8x8xf32>
    %cst_70 = arith.constant dense<0xFF800000> : vector<2x8xf32>
    %68 = vector.multi_reduction <maximumf>, %67, %cst_70 [2] : vector<2x8x8xf32> to vector<2x8xf32>
    %69 = vector.shape_cast %68 : vector<2x8xf32> to vector<2x8x1xf32>
    %70 = vector.broadcast %69 : vector<2x8x1xf32> to vector<2x8x8xf32>
    %71 = arith.subf %67, %70 : vector<2x8x8xf32>
    %72 = math.exp %71 : vector<2x8x8xf32>
    %cst_71 = arith.constant dense<0.000000e+00> : vector<2x8xf32>
    %73 = vector.multi_reduction <add>, %72, %cst_71 [2] : vector<2x8x8xf32> to vector<2x8xf32>
    %74 = vector.shape_cast %73 : vector<2x8xf32> to vector<2x8x1xf32>
    %75 = tpu.reciprocal %74 {approx = true} : vector<2x8x1xf32> -> vector<2x8x1xf32>
    %76 = vector.broadcast %75 : vector<2x8x1xf32> to vector<2x8x8xf32>
    %77 = arith.mulf %72, %76 : vector<2x8x8xf32>
    %78 = arith.truncf %77 : vector<2x8x8xf32> to vector<2x8x8xbf16>
    "tpu.trace_start"() <{level = 10 : i32, message = "hqk,hkd->hqd"}> : () -> ()
    %cst_72 = arith.constant dense<0.000000e+00> : vector<2x8x64xf32>
    %79 = tpu.matmul %78, %62, %cst_72 {dimension_numbers = #tpu.dot_dimension_numbers<[2], [1], [1], [2], [0, 0, 0, 1, 1, 2], [0], [0]>} : vector<2x8x8xbf16>, vector<2x8x64xbf16>, vector<2x8x64xf32> -> vector<2x8x64xf32>
    "tpu.trace_stop"() : () -> ()
    %80 = vector.extract_strided_slice %79 {offsets = [0, 0, 0], sizes = [1, 8, 64], strides = [1, 1, 1]} : vector<2x8x64xf32> to vector<1x8x64xf32>
    %81 = vector.shape_cast %80 : vector<1x8x64xf32> to vector<8x64xf32>
    %82 = vector.extract_strided_slice %79 {offsets = [1, 0, 0], sizes = [1, 8, 64], strides = [1, 1, 1]} : vector<2x8x64xf32> to vector<1x8x64xf32>
    %83 = vector.shape_cast %82 : vector<1x8x64xf32> to vector<8x64xf32>
    %84 = tpu.concatenate %81, %83 in 1 : vector<8x64xf32>, vector<8x64xf32> -> vector<8x128xf32>
    %85 = arith.truncf %84 : vector<8x128xf32> to vector<8x128xbf16>
    %c0_73 = arith.constant 0 : index
    %c0_74 = arith.constant 0 : index
    %c0_75 = arith.constant 0 : index
    %86 = vector.load %arg8[%c0_73, %c0_74, %c0_75] : memref<1x128x128xbf16, #tpu.memory_space<vmem>>, vector<1x128x128xbf16>
    %87 = vector.shape_cast %86 : vector<1x128x128xbf16> to vector<128x128xbf16>
    %cst_76 = arith.constant dense<0.000000e+00> : vector<8x128xf32>
    %88 = tpu.matmul %85, %87, %cst_76 {dimension_numbers = #tpu.dot_dimension_numbers<[1], [0], [0], [1], [0, 0, 1, 1], [], []>} : vector<8x128xbf16>, vector<128x128xbf16>, vector<8x128xf32> -> vector<8x128xf32>
    %c0_77 = arith.constant 0 : index
    %c0_78 = arith.constant 0 : index
    %c0_79 = arith.constant 0 : index
    %89 = vector.load %arg9[%c0_77, %c0_78, %c0_79] : memref<1x1x128xf32, #tpu.memory_space<vmem>>, vector<1x1x128xf32>
    %90 = vector.shape_cast %89 : vector<1x1x128xf32> to vector<1x128xf32>
    %91 = vector.broadcast %90 : vector<1x128xf32> to vector<8x128xf32>
    %92 = arith.addf %88, %91 : vector<8x128xf32>
    %93 = arith.addf %3, %92 : vector<8x128xf32>
    %c0_80 = arith.constant 0 : index
    %c0_81 = arith.constant 0 : index
    %c0_82 = arith.constant 0 : index
    %94 = vector.load %arg10[%c0_80, %c0_81, %c0_82] : memref<1x1x128xf32, #tpu.memory_space<vmem>>, vector<1x1x128xf32>
    %95 = vector.shape_cast %94 : vector<1x1x128xf32> to vector<1x128xf32>
    %c0_83 = arith.constant 0 : index
    %c0_84 = arith.constant 0 : index
    %c0_85 = arith.constant 0 : index
    %96 = vector.load %arg11[%c0_83, %c0_84, %c0_85] : memref<1x1x128xf32, #tpu.memory_space<vmem>>, vector<1x1x128xf32>
    %97 = vector.shape_cast %96 : vector<1x1x128xf32> to vector<1x128xf32>
    %cst_86 = arith.constant dense<0.000000e+00> : vector<8xf32>
    %98 = vector.multi_reduction <add>, %93, %cst_86 [1] : vector<8x128xf32> to vector<8xf32>
    %99 = vector.shape_cast %98 : vector<8xf32> to vector<8x1xf32>
    %cst_87 = arith.constant 1.280000e+02 : f32
    %100 = vector.broadcast %cst_87 : f32 to vector<8x1xf32>
    %101 = arith.divf %99, %100 : vector<8x1xf32>
    %102 = vector.broadcast %101 : vector<8x1xf32> to vector<8x128xf32>
    %103 = arith.subf %93, %102 : vector<8x128xf32>
    %104 = arith.mulf %103, %103 : vector<8x128xf32>
    %cst_88 = arith.constant dense<0.000000e+00> : vector<8xf32>
    %105 = vector.multi_reduction <add>, %104, %cst_88 [1] : vector<8x128xf32> to vector<8xf32>
    %106 = vector.shape_cast %105 : vector<8xf32> to vector<8x1xf32>
    %cst_89 = arith.constant 1.280000e+02 : f32
    %107 = vector.broadcast %cst_89 : f32 to vector<8x1xf32>
    %108 = arith.divf %106, %107 : vector<8x1xf32>
    %109 = vector.broadcast %101 : vector<8x1xf32> to vector<8x128xf32>
    %110 = arith.subf %93, %109 : vector<8x128xf32>
    %cst_90 = arith.constant 9.99999996E-13 : f32
    %111 = vector.broadcast %cst_90 : f32 to vector<8x1xf32>
    %112 = arith.addf %108, %111 : vector<8x1xf32>
    %113 = math.rsqrt %112 : vector<8x1xf32>
    %114 = vector.broadcast %113 : vector<8x1xf32> to vector<8x128xf32>
    %115 = arith.mulf %110, %114 : vector<8x128xf32>
    %116 = vector.broadcast %95 : vector<1x128xf32> to vector<8x128xf32>
    %117 = arith.mulf %115, %116 : vector<8x128xf32>
    %118 = vector.broadcast %97 : vector<1x128xf32> to vector<8x128xf32>
    %119 = arith.addf %117, %118 : vector<8x128xf32>
    %120 = arith.truncf %119 : vector<8x128xf32> to vector<8x128xbf16>
    %c0_91 = arith.constant 0 : index
    %c0_92 = arith.constant 0 : index
    %c0_93 = arith.constant 0 : index
    %121 = vector.load %arg12[%c0_91, %c0_92, %c0_93] : memref<1x128x256xbf16, #tpu.memory_space<vmem>>, vector<1x128x256xbf16>
    %122 = vector.shape_cast %121 : vector<1x128x256xbf16> to vector<128x256xbf16>
    %cst_94 = arith.constant dense<0.000000e+00> : vector<8x256xf32>
    %123 = tpu.matmul %120, %122, %cst_94 {dimension_numbers = #tpu.dot_dimension_numbers<[1], [0], [0], [1], [0, 0, 1, 1], [], []>} : vector<8x128xbf16>, vector<128x256xbf16>, vector<8x256xf32> -> vector<8x256xf32>
    %c0_95 = arith.constant 0 : index
    %c0_96 = arith.constant 0 : index
    %c0_97 = arith.constant 0 : index
    %124 = vector.load %arg13[%c0_95, %c0_96, %c0_97] : memref<1x1x256xf32, #tpu.memory_space<vmem>>, vector<1x1x256xf32>
    %125 = vector.shape_cast %124 : vector<1x1x256xf32> to vector<1x256xf32>
    %126 = vector.broadcast %125 : vector<1x256xf32> to vector<8x256xf32>
    %127 = arith.addf %123, %126 : vector<8x256xf32>
    %128 = arith.mulf %127, %127 : vector<8x256xf32>
    %129 = arith.mulf %127, %128 : vector<8x256xf32>
    %cst_98 = arith.constant 4.471500e-02 : f32
    %130 = vector.broadcast %cst_98 : f32 to vector<8x256xf32>
    %131 = arith.mulf %130, %129 : vector<8x256xf32>
    %132 = arith.addf %127, %131 : vector<8x256xf32>
    %cst_99 = arith.constant 0.797884583 : f32
    %133 = vector.broadcast %cst_99 : f32 to vector<8x256xf32>
    %134 = arith.mulf %133, %132 : vector<8x256xf32>
    %135 = math.tanh %134 : vector<8x256xf32>
    %cst_100 = arith.constant 1.000000e+00 : f32
    %136 = vector.broadcast %cst_100 : f32 to vector<8x256xf32>
    %137 = arith.addf %136, %135 : vector<8x256xf32>
    %cst_101 = arith.constant 5.000000e-01 : f32
    %138 = vector.broadcast %cst_101 : f32 to vector<8x256xf32>
    %139 = arith.mulf %138, %137 : vector<8x256xf32>
    %140 = arith.mulf %127, %139 : vector<8x256xf32>
    %141 = arith.truncf %140 : vector<8x256xf32> to vector<8x256xbf16>
    %c0_102 = arith.constant 0 : index
    %c0_103 = arith.constant 0 : index
    %c0_104 = arith.constant 0 : index
    %142 = vector.load %arg14[%c0_102, %c0_103, %c0_104] : memref<1x256x128xbf16, #tpu.memory_space<vmem>>, vector<1x256x128xbf16>
    %143 = vector.shape_cast %142 : vector<1x256x128xbf16> to vector<256x128xbf16>
    %cst_105 = arith.constant dense<0.000000e+00> : vector<8x128xf32>
    %144 = tpu.matmul %141, %143, %cst_105 {dimension_numbers = #tpu.dot_dimension_numbers<[1], [0], [0], [1], [0, 0, 1, 1], [], []>} : vector<8x256xbf16>, vector<256x128xbf16>, vector<8x128xf32> -> vector<8x128xf32>
    %c0_106 = arith.constant 0 : index
    %c0_107 = arith.constant 0 : index
    %c0_108 = arith.constant 0 : index
    %145 = vector.load %arg15[%c0_106, %c0_107, %c0_108] : memref<1x1x128xf32, #tpu.memory_space<vmem>>, vector<1x1x128xf32>
    %146 = vector.shape_cast %145 : vector<1x1x128xf32> to vector<1x128xf32>
    %147 = vector.broadcast %146 : vector<1x128xf32> to vector<8x128xf32>
    %148 = arith.addf %144, %147 : vector<8x128xf32>
    %149 = arith.addf %119, %148 : vector<8x128xf32>
    %c0_109 = arith.constant 0 : index
    %c0_110 = arith.constant 0 : index
    %c0_111 = arith.constant 0 : index
    %150 = vector.load %arg16[%c0_109, %c0_110, %c0_111] : memref<1x1x128xf32, #tpu.memory_space<vmem>>, vector<1x1x128xf32>
    %151 = vector.shape_cast %150 : vector<1x1x128xf32> to vector<1x128xf32>
    %c0_112 = arith.constant 0 : index
    %c0_113 = arith.constant 0 : index
    %c0_114 = arith.constant 0 : index
    %152 = vector.load %arg17[%c0_112, %c0_113, %c0_114] : memref<1x1x128xf32, #tpu.memory_space<vmem>>, vector<1x1x128xf32>
    %153 = vector.shape_cast %152 : vector<1x1x128xf32> to vector<1x128xf32>
    %cst_115 = arith.constant dense<0.000000e+00> : vector<8xf32>
    %154 = vector.multi_reduction <add>, %149, %cst_115 [1] : vector<8x128xf32> to vector<8xf32>
    %155 = vector.shape_cast %154 : vector<8xf32> to vector<8x1xf32>
    %cst_116 = arith.constant 1.280000e+02 : f32
    %156 = vector.broadcast %cst_116 : f32 to vector<8x1xf32>
    %157 = arith.divf %155, %156 : vector<8x1xf32>
    %158 = vector.broadcast %157 : vector<8x1xf32> to vector<8x128xf32>
    %159 = arith.subf %149, %158 : vector<8x128xf32>
    %160 = arith.mulf %159, %159 : vector<8x128xf32>
    %cst_117 = arith.constant dense<0.000000e+00> : vector<8xf32>
    %161 = vector.multi_reduction <add>, %160, %cst_117 [1] : vector<8x128xf32> to vector<8xf32>
    %162 = vector.shape_cast %161 : vector<8xf32> to vector<8x1xf32>
    %cst_118 = arith.constant 1.280000e+02 : f32
    %163 = vector.broadcast %cst_118 : f32 to vector<8x1xf32>
    %164 = arith.divf %162, %163 : vector<8x1xf32>
    %165 = vector.broadcast %157 : vector<8x1xf32> to vector<8x128xf32>
    %166 = arith.subf %149, %165 : vector<8x128xf32>
    %cst_119 = arith.constant 9.99999996E-13 : f32
    %167 = vector.broadcast %cst_119 : f32 to vector<8x1xf32>
    %168 = arith.addf %164, %167 : vector<8x1xf32>
    %169 = math.rsqrt %168 : vector<8x1xf32>
    %170 = vector.broadcast %169 : vector<8x1xf32> to vector<8x128xf32>
    %171 = arith.mulf %166, %170 : vector<8x128xf32>
    %172 = vector.broadcast %151 : vector<1x128xf32> to vector<8x128xf32>
    %173 = arith.mulf %171, %172 : vector<8x128xf32>
    %174 = vector.broadcast %153 : vector<1x128xf32> to vector<8x128xf32>
    %175 = arith.addf %173, %174 : vector<8x128xf32>
    %c0_120 = arith.constant 0 : index
    %c0_121 = arith.constant 0 : index
    %176 = vector.load %arg23[%c0_120, %c0_121] : memref<8x128xf32, #tpu.memory_space<vmem>>, vector<8x128xf32>
    tpu.vector_store %arg23[%c0_120, %c0_121], %175 {strides = array<i32>} : memref<8x128xf32, #tpu.memory_space<vmem>>, vector<8x128xf32>,
    %c1_i32 = arith.constant 1 : i32
    %177 = arith.cmpi eq, %arg1, %c1_i32 : i32
    %178 = arith.extui %177 : i1 to i32
    %c0_i32_122 = arith.constant 0 : i32
    %179 = arith.cmpi ne, %178, %c0_i32_122 : i32
    scf.if %179 {
      %180 = vector.extract_strided_slice %175 {offsets = [0, 0], sizes = [1, 128], strides = [1, 1]} : vector<8x128xf32> to vector<1x128xf32>
      %c0_123 = arith.constant 0 : index
      %c0_124 = arith.constant 0 : index
      %181 = vector.load %arg18[%c0_123, %c0_124] : memref<128x128xf32, #tpu.memory_space<vmem>>, vector<128x128xf32>
      %cst_125 = arith.constant dense<0.000000e+00> : vector<1x128xf32>
      %182 = tpu.matmul %180, %181, %cst_125 {dimension_numbers = #tpu.dot_dimension_numbers<[1], [0], [0], [1], [0, 0, 1, 1], [], []>} : vector<1x128xf32>, vector<128x128xf32>, vector<1x128xf32> -> vector<1x128xf32>
      %c0_126 = arith.constant 0 : index
      %c0_127 = arith.constant 0 : index
      %183 = vector.load %arg19[%c0_126, %c0_127] : memref<1x128xf32, #tpu.memory_space<vmem>>, vector<1x128xf32>
      %184 = arith.addf %182, %183 : vector<1x128xf32>
      %185 = math.tanh %184 : vector<1x128xf32>
      %c0_128 = arith.constant 0 : index
      %c0_129 = arith.constant 0 : index
      %186 = vector.load %arg20[%c0_128, %c0_129] : memref<128x128xf32, #tpu.memory_space<vmem>>, vector<128x128xf32>
      %cst_130 = arith.constant dense<0.000000e+00> : vector<1x128xf32>
      %187 = tpu.matmul %185, %186, %cst_130 {dimension_numbers = #tpu.dot_dimension_numbers<[1], [0], [0], [1], [0, 0, 1, 1], [], []>} : vector<1x128xf32>, vector<128x128xf32>, vector<1x128xf32> -> vector<1x128xf32>
      %c0_131 = arith.constant 0 : index
      %c0_132 = arith.constant 0 : index
      %188 = vector.load %arg21[%c0_131, %c0_132] : memref<1x128xf32, #tpu.memory_space<vmem>>, vector<1x128xf32>
      %189 = arith.addf %187, %188 : vector<1x128xf32>
      %190 = vector.shape_cast %189 : vector<1x128xf32> to vector<1x1x128xf32>
      %c0_133 = arith.constant 0 : index
      %c0_134 = arith.constant 0 : index
      %c0_135 = arith.constant 0 : index
      %191 = vector.load %arg22[%c0_133, %c0_134, %c0_135] : memref<1x1x128xf32, #tpu.memory_space<vmem>>, vector<1x1x128xf32>
      tpu.vector_store %arg22[%c0_133, %c0_134, %c0_135], %190 {strides = array<i32>} : memref<1x1x128xf32, #tpu.memory_space<vmem>>, vector<1x1x128xf32>,
    } else {
    }
    return
  }
  func.func @transform_0(%arg0: i32, %arg1: i32) -> (i32, i32, i32) {
    %c0_i32 = arith.constant 0 : i32
    %c0_i32_0 = arith.constant 0 : i32
    %c0_i32_1 = arith.constant 0 : i32
    return %arg0, %c0_i32, %c0_i32_0 : i32, i32, i32
  }
  func.func @transform_1(%arg0: i32, %arg1: i32) -> (i32, i32, i32) {
    %c0_i32 = arith.constant 0 : i32
    %c0_i32_0 = arith.constant 0 : i32
    %c0_i32_1 = arith.constant 0 : i32
    return %arg0, %c0_i32, %c0_i32_0 : i32, i32, i32
  }
  func.func @transform_2(%arg0: i32, %arg1: i32) -> (i32, i32) {
    %c0_i32 = arith.constant 0 : i32
    %c0_i32_0 = arith.constant 0 : i32
    %c0_i32_1 = arith.constant 0 : i32
    return %c0_i32, %c0_i32_0 : i32, i32
  }
  func.func @transform_3(%arg0: i32, %arg1: i32) -> (i32, i32) {
    %c0_i32 = arith.constant 0 : i32
    %c0_i32_0 = arith.constant 0 : i32
    %c0_i32_1 = arith.constant 0 : i32
    return %c0_i32, %c0_i32_0 : i32, i32
  }
  func.func @transform_4(%arg0: i32, %arg1: i32) -> (i32, i32, i32, i32, i32) {
    %c0_i32 = arith.constant 0 : i32
    %c0_i32_0 = arith.constant 0 : i32
    %c0_i32_1 = arith.constant 0 : i32
    %c0_i32_2 = arith.constant 0 : i32
    %c0_i32_3 = arith.constant 0 : i32
    return %arg1, %c0_i32, %c0_i32_0, %c0_i32_1, %c0_i32_2 : i32, i32, i32, i32, i32
  }
  func.func @transform_5(%arg0: i32, %arg1: i32) -> (i32, i32, i32, i32, i32) {
    %c0_i32 = arith.constant 0 : i32
    %c0_i32_0 = arith.constant 0 : i32
    %c0_i32_1 = arith.constant 0 : i32
    %c0_i32_2 = arith.constant 0 : i32
    %c0_i32_3 = arith.constant 0 : i32
    return %arg1, %c0_i32, %c0_i32_0, %c0_i32_1, %c0_i32_2 : i32, i32, i32, i32, i32
  }
  func.func @transform_6(%arg0: i32, %arg1: i32) -> (i32, i32, i32) {
    %c0_i32 = arith.constant 0 : i32
    %c0_i32_0 = arith.constant 0 : i32
    %c0_i32_1 = arith.constant 0 : i32
    return %arg1, %c0_i32, %c0_i32_0 : i32, i32, i32
  }
  func.func @transform_7(%arg0: i32, %arg1: i32) -> (i32, i32, i32) {
    %c0_i32 = arith.constant 0 : i32
    %c0_i32_0 = arith.constant 0 : i32
    %c0_i32_1 = arith.constant 0 : i32
    return %arg1, %c0_i32, %c0_i32_0 : i32, i32, i32
  }
  func.func @transform_8(%arg0: i32, %arg1: i32) -> (i32, i32, i32) {
    %c0_i32 = arith.constant 0 : i32
    %c0_i32_0 = arith.constant 0 : i32
    %c0_i32_1 = arith.constant 0 : i32
    return %arg1, %c0_i32, %c0_i32_0 : i32, i32, i32
  }
  func.func @transform_9(%arg0: i32, %arg1: i32) -> (i32, i32, i32) {
    %c0_i32 = arith.constant 0 : i32
    %c0_i32_0 = arith.constant 0 : i32
    %c0_i32_1 = arith.constant 0 : i32
    return %arg1, %c0_i32, %c0_i32_0 : i32, i32, i32
  }
  func.func @transform_10(%arg0: i32, %arg1: i32) -> (i32, i32, i32) {
    %c0_i32 = arith.constant 0 : i32
    %c0_i32_0 = arith.constant 0 : i32
    %c0_i32_1 = arith.constant 0 : i32
    return %arg1, %c0_i32, %c0_i32_0 : i32, i32, i32
  }
  func.func @transform_11(%arg0: i32, %arg1: i32) -> (i32, i32, i32) {
    %c0_i32 = arith.constant 0 : i32
    %c0_i32_0 = arith.constant 0 : i32
    %c0_i32_1 = arith.constant 0 : i32
    return %arg1, %c0_i32, %c0_i32_0 : i32, i32, i32
  }
  func.func @transform_12(%arg0: i32, %arg1: i32) -> (i32, i32, i32) {
    %c0_i32 = arith.constant 0 : i32
    %c0_i32_0 = arith.constant 0 : i32
    %c0_i32_1 = arith.constant 0 : i32
    return %arg1, %c0_i32, %c0_i32_0 : i32, i32, i32
  }
  func.func @transform_13(%arg0: i32, %arg1: i32) -> (i32, i32, i32) {
    %c0_i32 = arith.constant 0 : i32
    %c0_i32_0 = arith.constant 0 : i32
    %c0_i32_1 = arith.constant 0 : i32
    return %arg1, %c0_i32, %c0_i32_0 : i32, i32, i32
  }
  func.func @transform_14(%arg0: i32, %arg1: i32) -> (i32, i32, i32) {
    %c0_i32 = arith.constant 0 : i32
    %c0_i32_0 = arith.constant 0 : i32
    %c0_i32_1 = arith.constant 0 : i32
    return %arg1, %c0_i32, %c0_i32_0 : i32, i32, i32
  }
  func.func @transform_15(%arg0: i32, %arg1: i32) -> (i32, i32, i32) {
    %c0_i32 = arith.constant 0 : i32
    %c0_i32_0 = arith.constant 0 : i32
    %c0_i32_1 = arith.constant 0 : i32
    return %arg1, %c0_i32, %c0_i32_0 : i32, i32, i32
  }
  func.func @transform_16(%arg0: i32, %arg1: i32) -> (i32, i32) {
    %c0_i32 = arith.constant 0 : i32
    %c0_i32_0 = arith.constant 0 : i32
    %c0_i32_1 = arith.constant 0 : i32
    return %c0_i32, %c0_i32_0 : i32, i32
  }
  func.func @transform_17(%arg0: i32, %arg1: i32) -> (i32, i32) {
    %c0_i32 = arith.constant 0 : i32
    %c0_i32_0 = arith.constant 0 : i32
    %c0_i32_1 = arith.constant 0 : i32
    return %c0_i32, %c0_i32_0 : i32, i32
  }
  func.func @transform_18(%arg0: i32, %arg1: i32) -> (i32, i32) {
    %c0_i32 = arith.constant 0 : i32
    %c0_i32_0 = arith.constant 0 : i32
    %c0_i32_1 = arith.constant 0 : i32
    return %c0_i32, %c0_i32_0 : i32, i32
  }
  func.func @transform_19(%arg0: i32, %arg1: i32) -> (i32, i32) {
    %c0_i32 = arith.constant 0 : i32
    %c0_i32_0 = arith.constant 0 : i32
    %c0_i32_1 = arith.constant 0 : i32
    return %c0_i32, %c0_i32_0 : i32, i32
  }
  func.func @transform_20(%arg0: i32, %arg1: i32) -> (i32, i32, i32) {
    %c0_i32 = arith.constant 0 : i32
    %c0_i32_0 = arith.constant 0 : i32
    %c0_i32_1 = arith.constant 0 : i32
    return %arg0, %c0_i32, %c0_i32_0 : i32, i32, i32
  }
}

</mosaic_0001>

<bundles_post_ra>
// kernel: classifier_forward.1
= control target key start
LH: loop header
LB: loop body
LE: loop exit
PB: predicated region body
PF: predicated region fallthrough
CT: control target
= control target key end

     0   :  { %s3625_s0 = inlined_call_operand.vmem [shape: f32[2,8,128], index: 0, kind: input, shape index: {}]   ;;  %s3626_s1 = inlined_call_operand.vmem [shape: f32[2,1,8], index: 1, kind: input, shape index: {}]   ;;  %s3627_s2 = inlined_call_operand.vmem [shape: f32[1,128], index: 2, kind: input, shape index: {}]   ;;  %s3628_s3 = inlined_call_operand.vmem [shape: f32[1,128], index: 3, kind: input, shape index: {}]   ;;  %s3629_s4 = inlined_call_operand.vmem [shape: bf16[2,3,2,128,64], index: 4, kind: input, shape index: {}]   ;;  %s3630_s5 = inlined_call_operand.vmem [shape: f32[2,3,2,1,64], index: 5, kind: input, shape index: {}]   ;;  %s3631_s6 = inlined_call_operand.vmem [shape: bf16[2,128,128], index: 6, kind: input, shape index: {}]   ;;  %s3632_s7 = inlined_call_operand.vmem [shape: f32[2,1,128], index: 7, kind: input, shape index: {}]   ;;  %s3633_s8 = inlined_call_operand.vmem [shape: f32[2,1,128], index: 8, kind: input, shape index: {}]   ;;  %s3634_s9 = inlined_call_operand.vmem [shape: f32[2,1,128], index: 9, kind: input, shape index: {}]   ;;  %s3635_s10 = inlined_call_operand.vmem [shape: bf16[2,128,256], index: 10, kind: input, shape index: {}]   ;;  %s3636_s11 = inlined_call_operand.vmem [shape: f32[2,1,256], index: 11, kind: input, shape index: {}]   ;;  %s3637_s12 = inlined_call_operand.vmem [shape: bf16[2,256,128], index: 12, kind: input, shape index: {}]   ;;  %s3638_s13 = inlined_call_operand.vmem [shape: f32[2,1,128], index: 13, kind: input, shape index: {}]   ;;  %s3639_s14 = inlined_call_operand.vmem [shape: f32[2,1,128], index: 14, kind: input, shape index: {}]   ;;  %s3640_s15 = inlined_call_operand.vmem [shape: f32[2,1,128], index: 15, kind: input, shape index: {}]   ;;  %s3641_s16 = inlined_call_operand.vmem [shape: f32[128,128], index: 16, kind: input, shape index: {}]   ;;  %s3642_s17 = inlined_call_operand.vmem [shape: f32[1,128], index: 17, kind: input, shape index: {}]   ;;  %s3643_s18 = inlined_call_operand.vmem [shape: f32[128,128], index: 18, kind: input, shape index: {}]   ;;  %s3644_s19 = inlined_call_operand.vmem [shape: f32[1,128], index: 19, kind: input, shape index: {}]   ;;  %s3645_s20 = inlined_call_operand.hbm [shape: f32[2,1,128], index: 20, kind: output, shape index: {}]  }
   0x1   :  { %3662 = sst [smem:[#allocation19_spill]] %s3625_s0 }
   0x2   :  { %3663 = sst [smem:[#allocation20_spill]] %s3626_s1 }
   0x3   :  { %3664 = sst [smem:[#allocation21_spill]] %s3627_s2 }
   0x4   :  { %3665 = sst [smem:[#allocation22_spill]] %s3628_s3 }
   0x5   :  { %3666 = sst [smem:[#allocation23_spill]] %s3629_s4 }
   0x6   :  { %3667 = sst [smem:[#allocation24_spill]] %s3630_s5 }
   0x7   :  { %3668 = sst [smem:[#allocation25_spill]] %s3631_s6 }
   0x8   :  { %3669 = sst [smem:[#allocation26_spill]] %s3634_s9 }
   0x9   :  { %3670 = sst [smem:[#allocation27_spill]] %s3635_s10 }
   0xa   :  { %3671 = sst [smem:[#allocation28_spill]] %s3640_s15 }
   0xb   :  { %3672 = sst [smem:[#allocation29_spill]] %s3641_s16 }
   0xc   :  { %3673 = sst [smem:[#allocation30_spill]] %s3642_s17 }
   0xd   :  { %3674 = sst [smem:[#allocation31_spill]] %s3643_s18 }
   0xe   :  { %3675 = sst [smem:[#allocation32_spill]] %s3644_s19 }
   0xf   :  { %3676 = sst [smem:[#allocation33_spill]] %s3645_s20 }
  0x10   :  { %25 = vsyncpa [#allocation4], 0 }
  0x11   :  { %27 = vsyncpa [#allocation4 + $0x1], 0  ;;  %s3134_s1 = smov 0   ;;  %s3136_s22 = smov 0  }
  0x12   :  { %s3138_s23 = smov 0   ;;  %s3140_s24 = smov 0  }
  0x13   :  { %s3142_s2 = smov 0   ;;  %s3144_s25 = smov 0  }
  0x14   :  { %s3146_s3 = smov 0   ;;  %s3148_s26 = smov 0  }
  0x15 LB: > { %3677 = sst [smem:[#allocation6_spill]] %s2996_s1  ;;  %s2265_s27 = sadd.s32 4294967295, %s3024_s26   ;;  %s3024_s26 = sphi %s3148_s26, %s33_s26   ;;  %s3020_s3 = sphi %s3146_s3, %s3731_s3   ;;  %s3016_s25 = sphi %s3144_s25, %s3730_s25   ;;  %s3012_s2 = sphi %s3142_s2, %s3729_s2   ;;  %s3008_s24 = sphi %s3140_s24, %s3728_s24   ;;  %s3004_s23 = sphi %s3138_s23, %s3727_s23   ;;  %s3000_s22 = sphi %s3136_s22, %s3733_s22   ;;  %s2996_s1 = sphi %s3134_s1, %s3732_s1  }
  0x16   : > { %3678 = sst [smem:[#allocation7_spill]] %s3004_s23  ;;  %s2266_s28 = sadd.s32 4294967294, %s3024_s26  }
  0x17   : > { %3679 = sst [smem:[#allocation8_spill]] %s3008_s24  ;;  %s42_s4 = sadd.s32 1, %s3016_s25 }
  0x18   : > { %3680 = sst [smem:[#allocation9_spill]] %s3012_s2  ;;  %p43_p0 = scmp.ge.s32.totalorder %s42_s4, 2 }
  0x19   : > { %3681 = sst [smem:[#allocation10_spill]] %s3016_s25  ;;  %s45_s29 = sadd.s32 1, %s3020_s3 }
  0x1a   : > { %3682 = sst [smem:[#allocation11_spill]] %s3020_s3  ;;  %p552_p1 = scmp.ne.s32.totalorder %s3004_s23, %s3000_s22 }
  0x1b   : > { %3683 = sst [smem:[#allocation12_spill]] %s3024_s26  ;;  %p553_p2 = scmp.eq.s32.totalorder %s2265_s27, 3 }
  0x1c   : > { %s3735_s4 = smov (%p43_p0, %s42_s4), 0  ;;  %s3737_s29 = smov (!%p43_p0, %s45_s29), %s3020_s3 }
  0x1d   : > { %3684 = sst [smem:[#allocation13_spill]] %s3735_s4  ;;  %p3183_p3 = por %p553_p2, %p552_p1 }
  0x1e   : > { %p558_p4 = scmp.ne.s32.totalorder %s3000_s22, %s2996_s1  ;;  %p47_p5 = scmp.ge.s32.totalorder %s3737_s29, 2 }
  0x1f   : > { %s3685_s30 = scalar_select %p3183_p3, 1, 0 }
  0x20   : > { %p559_p6 = scmp.eq.s32.totalorder %s2266_s28, 3  ;;  %p2269_p7 = scmp.ge.s32.totalorder %s3024_s26, 1 }
  0x21   : > { %3686 = sst [smem:[#allocation14_spill]] %s3685_s30  ;;  %p690_p8 = scmp.lt.s32.totalorder %s3024_s26, 5 }
  0x22   : > { %s3739_s29 = smov (%p47_p5, %s3737_s29), 0  ;;  %p3193_p9 = por %p559_p6, %p558_p4 }
  0x23   : > { %3687 = sst [smem:[#allocation15_spill]] %s3739_s29  ;;  %p691_p10 = pnand %p2269_p7, %p690_p8 }
  0x24   : > { %s3688_s0 = scalar_select %p3193_p9, 1, 0 }
  0x25   : > { %s539_s21 = ssub.s32 %s3020_s3, %s3739_s29  ;;  %s542_s27 = sadd.s32 1, %s3004_s23 }
  0x26   : > { %3689 = sst [smem:[#allocation16_spill]] %s3688_s0  ;;  %p540_p11 = scmp.eq.s32.totalorder %s539_s21, 0 }
  0x27   : > { %694 = sbr.rel (%p691_p10) target bundleno = 2403 (0x963), region = 100 }
  0x28   : > { %s3201_s4 = scalar_select %p540_p11, %s3004_s23, %s542_s27  }
  0x2a   : > { %3690 = sst [smem:[#allocation17_spill]] %s3201_s4 }
  0x2c   : > { %p795_p12 = scmp.lt.s32.totalorder %s3012_s2, 1  ;;  %p802_p13 = scmp.lt.s32.totalorder %s3008_s24, 1 }
  0x2d   : > { %s3693_s1 = sld [smem:[#allocation19_spill]] }
  0x2e   : > { %s3207_s25 = scalar_select %p795_p12, %s3012_s2, 1 }
  0x2f   : > { %s3210_s0 = scalar_select %p802_p13, %s3008_s24, 1 }
  0x30   : > { %3691 = sst [smem:[#allocation18_spill]] %s3207_s25  ;;  %s2270_s21 = sshll.u32 %s3207_s25, 3 }
  0x31   : > { %s2815_s30 = smul.u32 384, %s3210_s0  ;;  %s2724_s2 = sshll.u32 %s3210_s0, 6 }
  0x32   : > { %s2816_s20 = smul.u32 6, %s3210_s0  ;;  %s3694_s18 = sld [smem:[#allocation23_spill]] }
  0x33   : > { %s798_s26 = scalar_lea.vmem %s3693_s1, %s2270_s21  ;;  %s3695_s6 = sld [smem:[#allocation25_spill]] }
  0x34   : > { %s3696_s5 = sld [smem:[#allocation24_spill]]  ;;  %s2725_s15 = sshll.u32 %s3210_s0, 7 }
  0x35   : > { %s2276_s24 = sshll.u32 %s3210_s0, 1  ;;  %s3698_s10 = sld [smem:[#allocation27_spill]] }
  0x36   : > { %s3260_s4 = scalar_lea.vmem %s3636_s11, %s2276_s24  ;;  %s3265_s25 = scalar_lea.vmem %s3637_s12, %s2725_s15 }
  0x37   : > { %s841_s19 = scalar_lea.vmem %s3638_s13, %s3210_s0  ;;  %s3701_s23 = sld [smem:[#allocation8_spill]] }
  0x38   : > { %s3226_s16 = scalar_lea.vmem %s3694_s18, %s2815_s30 }
  0x39   : > { %s3231_s29 = scalar_lea.vmem %s3695_s6, %s2724_s2  ;;  %s844_s6 = scalar_lea.vmem %s3639_s14, %s3210_s0 }
  0x3a   : > { %s3236_s1 = scalar_lea.vmem %s3696_s5, %s2816_s20  ;;  %s3700_s20 = sand.u32 1, %s3000_s22  }
  0x3b   : > { %s3255_s28 = scalar_lea.vmem %s3698_s10, %s2725_s15  ;;  %s3699_s10 = sld [smem:[#allocation28_spill]] }
  0x3c   : > { %s3281_s24 = scalar_lea.vmem [#allocation3], %s3700_s20 }
  0x3d   : > { %p2279_p0 = scmp.ne.s32.totalorder %s3701_s23, 0 }
  0x3e   : > { %s3703_s30 = sld [smem:[#allocation22_spill]] (!%p2279_p0) }
  0x3f   : > { %852 = sbr.rel (%p2279_p0) target bundleno = 336 (0x150), region = 104 }
  0x41   : > { %s847_s9 = scalar_lea.vmem %s3699_s10, %s3210_s0 }
  0x44   : > { %v853_v0 = vld [vmem:[%s798_s26] sm:$0xff]  ;;  %v3026_v1 = vmov 128.0   ;;  %s3702_s26 = sld [smem:[#allocation21_spill]] }
  0x45   : > { %856 = vadd.xlane.f32.xlu0 %v853_v0  ;;  %2893 = vrcp.f32 %v3026_v1  ;;  %v2892_v23 = vld [vmem:[%s3703_s30] ss:$0 sm:$0xff] }
  0x4a   : > { %v2891_v21 = vld [vmem:[%s3702_s26] ss:$0 sm:$0xff] }
  0x4b   : > { %v2894_v2 = vpop.eup %2893 }
  0x4c   : > { %v859_v3 = vmul.f32 128.0, %v2894_v2  ;;  %vm863_vm0 = vweird.f32 %v2894_v2 }
  0x4e   : > { %v860_v4 = vsub.f32 1.0, %v859_v3 }
  0x50   : > { %v861_v5 = vmul.f32 %v2894_v2, %v860_v4 }
  0x52   : > { %v862_v6 = vadd.f32 %v2894_v2, %v861_v5 }
  0x54   : > { %v864_v7 = vsel %vm863_vm0, %v2894_v2, %v862_v6 }
  0xb8   : > { %v857_v8 = vpop.xlane.xlu0 %856 }
  0xb9   : > { %v865_v9 = vmul.f32 %v864_v7, %v857_v8 }
  0xbb   : > { %v866_v10 = vsub.f32 %v853_v0, %v865_v9 }
  0xbd   : > { %v867_v11 = vmul.f32 %v866_v10, %v866_v10 }
  0xbf   : > { %868 = vadd.xlane.f32.xlu0 %v867_v11 }
 0x132   : > { %v869_v12 = vpop.xlane.xlu0 %868 }
 0x133   : > { %v870_v13 = vmul.f32 %v869_v12, %v864_v7 }
 0x135   : > { %v871_v14 = vadd.f32 1e-12, %v870_v13 }
 0x137   : > { %2895 = vrsqrt.f32 %v871_v14  ;;  %vm878_vm2 = vweird.f32 %v871_v14 }
 0x13d   : > { %v2896_v15 = vpop.eup %2895 }
 0x13e   : > { %v873_v16 = vmul.f32 %v2896_v15, %v871_v14  ;;  %vm879_vm1 = vweird.f32 %v2896_v15 }
 0x13f   : > { %vm880_vm3 = vmor %vm878_vm2, %vm879_vm1 }
 0x140   : > { %v874_v17 = vmul.f32 %v2896_v15, %v873_v16 }
 0x142   : > { %v875_v18 = vmul.f32 0.5, %v874_v17 }
 0x144   : > { %v876_v19 = vsub.f32 1.5, %v875_v18 }
 0x146   : > { %v877_v20 = vmul.f32 %v2896_v15, %v876_v19 }
 0x148   : > { %v881_v22 = vsel %vm880_vm3, %v2896_v15, %v877_v20 }
 0x149   : > { %v882_v24 = vmul.f32 %v881_v22, %v866_v10 }
 0x14b   : > { %v886_v25 = vmul.f32 %v2891_v21, %v882_v24 }
 0x14d   : > { %v890_v26 = vadd.f32 %v2892_v23, %v886_v25 }
 0x14f   : > { %891 = vst [vmem:[#allocation2] sm:$0xff] %v890_v26 }
 0x150 PF: > { %v2758_v27 = vld [vmem:[%s3226_s16 + $0xf8] sm:$0xff]  ;;  %v2757_v29 = vld [vmem:[%s3226_s16 + $0xf0] sm:$0xff]  ;;  %v2756_v34 = vld [vmem:[%s3226_s16 + $0xe8] sm:$0xff]  ;;  %vm1397_vm4 = vcmask 523264   ;;  %s3704_s15 = sld [smem:[#allocation18_spill]]  ;;  %vm1443_vm5 = vcmask 64512   ;;  %s3707_s23 = scalar_lea.vmem %s3632_s7, %s3210_s0 }
 0x151   : > { %v2750_v28 = vld [vmem:[%s3226_s16 + $0xb8] sm:$0xff]  ;;  %1215 = vmatpush.bf16.msra.mxu3 %v2758_v27  ;;  %v2749_v30 = vld [vmem:[%s3226_s16 + $0xb0] sm:$0xff]  ;;  %v2748_v35 = vld [vmem:[%s3226_s16 + $0xa8] sm:$0xff]  ;;  %s3705_s18 = sld [smem:[#allocation20_spill]]  ;;  %vm1471_vm6 = vcmask 1043456   ;;  %s3708_s5 = scalar_lea.vmem %s3633_s8, %s3210_s0 }
 0x152   : > { %1131 = vmatpush.bf16.msra.mxu2 %v2750_v28  ;;  %v2742_v31 = vld [vmem:[%s3226_s16 + $0x78] sm:$0xff]  ;;  %v2741_v32 = vld [vmem:[%s3226_s16 + $0x70] sm:$0xff]  ;;  %v2740_v37 = vld [vmem:[%s3226_s16 + $0x68] sm:$0xff]  ;;  %s3709_s27 = sld [smem:[#allocation26_spill]] }
 0x153   : > { %1047 = vmatpush.bf16.msra.mxu1 %v2742_v31  ;;  %v2734_v33 = vld [vmem:[%s3226_s16 + $0x38] sm:$0xff]  ;;  %v2733_v36 = vld [vmem:[%s3226_s16 + $0x30] sm:$0xff]  ;;  %v2755_v38 = vld [vmem:[%s3226_s16 + $0xe0] sm:$0xff] }
 0x154   : > { %963 = vmatpush.bf16.msra.mxu0 %v2734_v33  ;;  %v2747_v39 = vld [vmem:[%s3226_s16 + $0xa0] sm:$0xff]  ;;  %v2732_v41 = vld [vmem:[%s3226_s16 + $0x28] sm:$0xff]  ;;  %v2754_v42 = vld [vmem:[%s3226_s16 + $0xd8] sm:$0xff] }
 0x155   : > { %1216 = vmatpush.bf16.msra.mxu3 %v2757_v29  ;;  %v2739_v40 = vld [vmem:[%s3226_s16 + $0x60] sm:$0xff]  ;;  %v2746_v43 = vld [vmem:[%s3226_s16 + $0x98] sm:$0xff]  ;;  %v2753_v46 = vld [vmem:[%s3226_s16 + $0xd0] sm:$0xff] }
 0x156   : > { %1132 = vmatpush.bf16.msra.mxu2 %v2749_v30  ;;  %v2731_v44 = vld [vmem:[%s3226_s16 + $0x20] sm:$0xff]  ;;  %v2738_v45 = vld [vmem:[%s3226_s16 + $0x58] sm:$0xff]  ;;  %v2745_v47 = vld [vmem:[%s3226_s16 + $0x90] sm:$0xff] }
 0x157   : > { %1048 = vmatpush.bf16.msra.mxu1 %v2741_v32  ;;  %v2730_v48 = vld [vmem:[%s3226_s16 + $0x18] sm:$0xff]  ;;  %v2737_v49 = vld [vmem:[%s3226_s16 + $0x50] sm:$0xff]  ;;  %v2752_v50 = vld [vmem:[%s3226_s16 + $0xc8] sm:$0xff]  ;;  %s3706_s2 = scalar_lea.vmem %s3705_s18, %s3704_s15  ;;  %s3712_s18 = sld [smem:[#allocation8_spill]] }
 0x158   : > { %964 = vmatpush.bf16.msra.mxu0 %v2733_v36  ;;  %v2744_v51 = vld [vmem:[%s3226_s16 + $0x88] sm:$0xff]  ;;  %v2729_v52 = vld [vmem:[%s3226_s16 + $0x10] sm:$0xff]  ;;  %v2751_v54 = vld [vmem:[%s3226_s16 + $0xc0] sm:$0xff]  ;;  %s3710_s17 = scalar_lea.vmem %s3709_s27, %s3210_s0 }
 0x159   : > { %1217 = vmatpush.bf16.msra.mxu3 %v2756_v34  ;;  %v2736_v53 = vld [vmem:[%s3226_s16 + $0x48] sm:$0xff]  ;;  %v3318_v55 = vld [vmem:[#allocation2] sm:$0xff]  ;;  %v2774_v19 = vld [vmem:[%s3226_s16 + $0x178] sm:$0xff] }
 0x15a   : > { %1133 = vmatpush.bf16.msra.mxu2 %v2748_v35  ;;  %v2743_v56 = vld [vmem:[%s3226_s16 + $0x80] sm:$0xff]  ;;  %v2728_v57 = vld [vmem:[%s3226_s16 + $0x8] sm:$0xff]  ;;  %v3325_v59 = vpack.c.bf16 %v3318_v55, %v3318_v55  ;;  %v2766_v20 = vld [vmem:[%s3226_s16 + $0x138] sm:$0xff] }
 0x15b   : > { %1049 = vmatpush.bf16.msra.mxu1 %v2740_v37  ;;  %v2735_v58 = vld [vmem:[%s3226_s16 + $0x40] sm:$0xff]  ;;  %v2773_v21 = vld [vmem:[%s3226_s16 + $0x170] sm:$0xff]  ;;  %v2772_v23 = vld [vmem:[%s3226_s16 + $0x168] sm:$0xff] }
 0x15c   : > { %965 = vmatpush.bf16.msra.mxu0 %v2732_v41  ;;  %v2727_v60 = vld [vmem:[%s3226_s16] sm:$0xff]  ;;  %v2765_v22 = vld [vmem:[%s3226_s16 + $0x130] sm:$0xff]  ;;  %v2764_v24 = vld [vmem:[%s3226_s16 + $0x128] sm:$0xff] }
 0x15d   : > { %1218 = vmatpush.bf16.msra.mxu3 %v2755_v38  ;;  %v2897_v62 = vld [vmem:[%s3236_s1 + $0x3] ss:$0 sm:$0xff]  ;;  %v2899_v63 = vld [vmem:[%s3236_s1 + $0x2] ss:$0 sm:$0xff]  ;;  %v2898_v4 = vld [vmem:[%s3236_s1 + $0x1] ss:$0 sm:$0xff] }
 0x15e   : > { %1134 = vmatpush.bf16.msra.mxu2 %v2747_v39  ;;  %v2900_v6 = vld [vmem:[%s3236_s1] ss:$0 sm:$0xff]  ;;  %v2770_v27 = vld [vmem:[%s3226_s16 + $0x158] sm:$0xff]  ;;  %v2769_v32 = vld [vmem:[%s3226_s16 + $0x150] sm:$0xff]  ;;  %p2721_p1 = scmp.ne.s32.totalorder %s3712_s18, 1 }
 0x15f   : > { %1050 = vmatpush.bf16.msra.mxu1 %v2739_v40  ;;  %v2771_v25 = vld [vmem:[%s3226_s16 + $0x160] sm:$0xff]  ;;  %v2762_v28 = vld [vmem:[%s3226_s16 + $0x118] sm:$0xff]  ;;  %v2768_v36 = vld [vmem:[%s3226_s16 + $0x148] sm:$0xff]  ;;  %s3715_s26 = sld [smem:[#allocation31_spill]] (!%p2721_p1) }
 0x160   : > { %966 = vmatpush.bf16.msra.mxu0 %v2731_v44  ;;  %v2763_v26 = vld [vmem:[%s3226_s16 + $0x120] sm:$0xff]  ;;  %v2760_v44 = vld [vmem:[%s3226_s16 + $0x108] sm:$0xff]  ;;  %s3718_s0 = sld [smem:[#allocation32_spill]] (!%p2721_p1) }
 0x161   : > { %1219 = vmatpush.bf16.msra.mxu3 %v2754_v42  ;;  %v2901_v29 = vld [vmem:[%s3706_s2] ss:$0 sm:$0xff] }
 0x162   : > { %1135 = vmatpush.bf16.msra.mxu2 %v2746_v43  ;;  %v2767_v41 = vld [vmem:[%s3226_s16 + $0x140] sm:$0xff]  ;;  %v2761_v43 = vld [vmem:[%s3226_s16 + $0x110] sm:$0xff] }
 0x163   : > { %1051 = vmatpush.bf16.msra.mxu1 %v2738_v45  ;;  %v2759_v45 = vld [vmem:[%s3226_s16 + $0x100] sm:$0xff]  ;;  %s3027_s16 = smov 64  }
 0x164   : > { %967 = vmatpush.bf16.msra.mxu0 %v2730_v48 }
 0x165   : > { %1220 = vmatpush.bf16.msra.mxu3 %v2753_v46  ;;  %s3716_s27 = smov (!%p2721_p1), %s3715_s26 }
 0x166   : > { %1136 = vmatpush.bf16.msra.mxu2 %v2745_v47 }
 0x167   : > { %1052 = vmatpush.bf16.msra.mxu1 %v2737_v49 }
 0x168   : > { %968 = vmatpush.bf16.msra.mxu0 %v2729_v52 }
 0x169   : > { %1221 = vmatpush.bf16.msra.mxu3 %v2752_v50 }
 0x16a   : > { %1137 = vmatpush.bf16.msra.mxu2 %v2744_v51 }
 0x16b   : > { %1053 = vmatpush.bf16.msra.mxu1 %v2736_v53 }
 0x16c   : > { %969 = vmatpush.bf16.msra.mxu0 %v2728_v57 }
 0x16d   : > { %1222 = vmatpush.bf16.msra.mxu3 %v2751_v54  ;;  %v2902_v54 = vld [vmem:[%s3236_s1 + $0x5] ss:$0 sm:$0xff] }
 0x16e   : > { %1138 = vmatpush.bf16.msra.mxu2 %v2743_v56 }
 0x16f   : > { %1054 = vmatpush.bf16.msra.mxu1 %v2735_v58 }
 0x170   : > { %1223 = vmatmul.bf16.vlgmr.msra.gmra.mxu3 %v3325_v59  ;;  %970 = vmatpush.bf16.msra.mxu0 %v2727_v60 }
 0x171   : > { %1139 = vmatmul.bf16.vlgmr.msra.gmra.mxu2 %v3325_v59 }
 0x172   : > { %1055 = vmatmul.bf16.vlgmr.msra.gmra.mxu1 %v3325_v59 }
 0x173   : > { %971 = vmatmul.bf16.vlgmr.msra.gmra.mxu0 %v3325_v59  ;;  %1383 = vmatpush.bf16.msrb.mxu1 %v2774_v19  ;;  %v2777_v19 = vld [vmem:[%s3231_s29 + $0x10] sm:$0xff] }
 0x174   : > { %1299 = vmatpush.bf16.msrb.mxu0 %v2766_v20  ;;  %v2776_v20 = vld [vmem:[%s3231_s29 + $0x8] sm:$0xff] }
 0x177   : > { %1384 = vmatpush.bf16.msrb.mxu1 %v2773_v21 }
 0x178   : > { %1300 = vmatpush.bf16.msrb.mxu0 %v2765_v22 }
 0x17b   : > { %1385 = vmatpush.bf16.msrb.mxu1 %v2772_v23 }
 0x17c   : > { %1301 = vmatpush.bf16.msrb.mxu0 %v2764_v24  ;;  %v2775_v24 = vld [vmem:[%s3231_s29] sm:$0xff] }
 0x17f   : > { %1386 = vmatpush.bf16.msrb.mxu1 %v2771_v25 }
 0x180   : > { %1302 = vmatpush.bf16.msrb.mxu0 %v2763_v26 }
 0x183   : > { %1387 = vmatpush.bf16.msrb.mxu1 %v2770_v27 }
 0x184   : > { %1303 = vmatpush.bf16.msrb.mxu0 %v2762_v28  ;;  %v2904_v28 = vld [vmem:[%s3707_s23] ss:$0 sm:$0xff] }
 0x187   : > { %1388 = vmatpush.bf16.msrb.mxu1 %v2769_v32 }
 0x188   : > { %1304 = vmatpush.bf16.msrb.mxu0 %v2761_v43 }
 0x18b   : > { %1389 = vmatpush.bf16.msrb.mxu1 %v2768_v36  ;;  %v2797_v36 = vld [vmem:[%s3255_s28 + $0x74] sm:$0xf] }
 0x18c   : > { %1305 = vmatpush.bf16.msrb.mxu0 %v2760_v44 }
 0x18f   : > { %1390 = vmatpush.bf16.msrb.mxu1 %v2767_v41 }
 0x190   : > { %1306 = vmatpush.bf16.msrb.mxu0 %v2759_v45 }
 0x192   : > { %1391 = vmatmul.bf16.vlgmr.msrb.gmra.mxu1 %v3325_v59 }
 0x193   : > { %1307 = vmatmul.bf16.vlgmr.msrb.gmra.mxu0 %v3325_v59 }
 0x1ef   : > { %v1056_v61 = vpop.f32.mrf.mxu1 }
 0x1f0   : > { %v972_v0 = vpop.f32.mrf.mxu0  ;;  %v1057_v11 = vadd.f32 %v2898_v4, %v1056_v61 }
 0x1f1   : > { %v973_v13 = vadd.f32 %v2900_v6, %v972_v0 }
 0x1f2   : > { %v1060_v17 = vpack.c.bf16 %v1057_v11, %v1057_v11 }
 0x1f3   : > { %v1224_v1 = vpop.f32.mrf.mxu3  ;;  %v976_v18 = vpack.c.bf16 %v973_v13, %v973_v13  ;;  %v2782_v13 = vld [vmem:[%s3231_s29 + $0x38] sm:$0xff] }
 0x1f4   : > { %v1140_v2 = vpop.f32.mrf.mxu2  ;;  %v1225_v3 = vadd.f32 %v2897_v62, %v1224_v1  ;;  %1581 = vmatpush.bf16.msra.mxu0 %v2782_v13 }
 0x1f5   : > { %v1141_v5 = vadd.f32 %v2899_v63, %v1140_v2  ;;  %v2903_v63 = vld [vmem:[%s3236_s1 + $0x4] ss:$0 sm:$0xff]  ;;  %s3713_s1 = sld [smem:[#allocation29_spill]] (!%p2721_p1) }
 0x1f6   : > { %v1228_v7 = vpack.c.bf16 %v1225_v3, %v1225_v3 }
 0x1f7   : > { %v1144_v8 = vpack.c.bf16 %v1141_v5, %v1141_v5  ;;  %v1058_v9 = vpop.f32.mrf.mxu1 }
 0x1f8   : > { %v1421_v10 = vsel %vm1397_vm4, %v1228_v7, 0  ;;  %v974_v14 = vpop.f32.mrf.mxu0 }
 0x1f9   : > { %v1402_v12 = vsel %vm1397_vm4, %v1144_v8, 0  ;;  %1430 = vmatpush.bf16.xpose.msrb.mxu3 %v1421_v10  ;;  %v2781_v14 = vld [vmem:[%s3231_s29 + $0x30] sm:$0xff] }
 0x1fa   : > { %1411 = vmatpush.bf16.xpose.msrb.mxu2 %v1402_v12  ;;  %1582 = vmatpush.bf16.msra.mxu0 %v2781_v14  ;;  %v2613_v14 = vld [vmem:[%s3255_s28 + $0x28] sm:$0xf0] }
 0x1fb   : > { %v1226_v15 = vpop.f32.mrf.mxu3  ;;  %s3714_s20 = smov (!%p2721_p1), %s3713_s1 }
 0x1fc   : > { %v1142_v16 = vpop.f32.mrf.mxu2  ;;  %v2780_v15 = vld [vmem:[%s3231_s29 + $0x28] sm:$0xff] }
 0x1fd   : > { %v2779_v16 = vld [vmem:[%s3231_s29 + $0x20] sm:$0xff] }
 0x1fe   : > { %1583 = vmatpush.bf16.msra.mxu0 %v2780_v15 }
 0x200   : > { %2558 = vmatmul.msk.bf16.vlgmr.msrb.gmra.mxu3 %vm1397_vm4, %v1060_v17  ;;  %v2778_v17 = vld [vmem:[%s3231_s29 + $0x18] sm:$0xff]  ;;  %s3717_s29 = sld [smem:[#allocation30_spill]] (!%p2721_p1) }
 0x201   : > { %2557 = vmatmul.msk.bf16.vlgmr.msrb.gmra.mxu2 %vm1397_vm4, %v976_v18 }
 0x202   : > { %1584 = vmatpush.bf16.msra.mxu0 %v2779_v16  ;;  %v2603_v16 = vld [vmem:[%s3255_s28 + $0x10] sm:$0xf] }
 0x206   : > { %1585 = vmatpush.bf16.msra.mxu0 %v2778_v17  ;;  %v2786_v17 = vld [vmem:[%s3255_s28 + $0x14] sm:$0xf0] }
 0x20a   : > { %1586 = vmatpush.bf16.msra.mxu0 %v2777_v19  ;;  %v2604_v19 = vor.u32 %v2786_v17, %v2603_v16 }
 0x20e   : > { %1587 = vmatpush.bf16.msra.mxu0 %v2776_v20  ;;  %v2605_v20 = vld [vmem:[%s3255_s28 + $0x18] sm:$0xf0] }
 0x20f   : > { %v1392_v57 = vpop.f32.mrf.mxu1 }
 0x210   : > { %v1393_v60 = vadd.f32 %v2902_v54, %v1392_v57  ;;  %v1308_v0 = vpop.f32.mrf.mxu0  ;;  %v2794_v57 = vld [vmem:[%s3255_s28 + $0x54] sm:$0xf0] }
 0x211   : > { %v1309_v1 = vadd.f32 %v2903_v63, %v1308_v0  ;;  %v2792_v63 = vld [vmem:[%s3255_s28 + $0x44] sm:$0xf0]  ;;  %v2791_v0 = vld [vmem:[%s3255_s28 + $0x44] sm:$0xf] }
 0x212   : > { %v1396_v59 = vpack.c.bf16 %v1393_v60, %v1393_v60  ;;  %1588 = vmatpush.bf16.msra.mxu0 %v2775_v24  ;;  %v2783_v24 = vld [vmem:[%s3255_s28 + $0x4] sm:$0xf] }
 0x213   : > { %v1312_v2 = vpack.c.bf16 %v1309_v1, %v1309_v1 }
 0x214   : > { %v1492_v61 = vsel %vm1471_vm6, %v1396_v59, 0  ;;  %v2637_v59 = vld [vmem:[%s3255_s28 + $0x58] sm:$0xf0] }
 0x215   : > { %1501 = vmatpush.bf16.msra.mxu3 %v1492_v61  ;;  %v1473_v3 = vsel %vm1471_vm6, %v1312_v2, 0  ;;  %v2629_v2 = vld [vmem:[%s3255_s28 + $0x48] sm:$0xf0] }
 0x216   : > { %1482 = vmatpush.bf16.msra.mxu2 %v1473_v3  ;;  %v2632_v3 = vor.u32 %v2791_v0, %v2629_v2 }
 0x217   : > { %v1394_v62 = vpop.f32.mrf.mxu1 }
 0x218   : > { %v1310_v4 = vpop.f32.mrf.mxu0  ;;  %v2627_v62 = vld [vmem:[%s3255_s28 + $0x40] sm:$0xf] }
 0x219   : > { %v2628_v1 = vor.u32 %v2792_v63, %v2627_v62  ;;  %v2619_v4 = vld [vmem:[%s3255_s28 + $0x30] sm:$0xf] }
 0x283   : > { %v1432_v30 = vpop.f32.mrf.mxu3 }
 0x284   : > { %v1413_v31 = vpop.f32.mrf.mxu2  ;;  %v1437_v33 = vmul.f32 0.125, %v1432_v30 }
 0x285   : > { %v1436_v35 = vmul.f32 0.125, %v1413_v31 }
 0x286   : > { %v1442_v34 = vadd.f32 %v2901_v29, %v1437_v33  ;;  %v3028_v33 = vmov 128.0  }
 0x287   : > { %v1441_v38 = vadd.f32 %v2901_v29, %v1436_v35  ;;  %v2798_v35 = vld [vmem:[%s3255_s28 + $0x74] sm:$0xf0] }
 0x288   : > { %v1447_v37 = vsel %vm1443_vm5, %v1442_v34, -inf }
 0x289   : > { %1448 = vmax.xlane.f32.xlu0 %v1447_v37  ;;  %v1444_v42 = vsel %vm1443_vm5, %v1441_v38, -inf }
 0x28b   : > { %v1434_v39 = vpop.f32.mrf.mxu3 }
 0x28c   : > { %v1415_v40 = vpop.f32.mrf.mxu2 }
 0x291   : > { %1445 = vmax.xlane.f32.xlu0 %v1444_v42 }
 0x2fc   : > { %v1449_v46 = vpop.xlane.xlu0 %1448 }
 0x2fd   : > { %v1451_v47 = vsub.f32 %v1442_v34, %v1449_v46  ;;  %v2651_v34 = vld [vmem:[%s3255_s28 + $0x70] sm:$0xf] }
 0x2fe   : > { %v2652_v37 = vor.u32 %v2798_v35, %v2651_v34 }
 0x2ff   : > { %v1454_v48 = vmul.f32 1.442695, %v1451_v47 }
 0x300   : > { %1735 = vmatpush.bf16.msra.mxu1 %v2652_v37 }
 0x301   : > { %2910 = vpow2.f32 %v1454_v48 }
 0x304   : > { %v1446_v49 = vpop.xlane.xlu0 %1445 }
 0x305   : > { %v1450_v50 = vsub.f32 %v1441_v38, %v1446_v49  ;;  %v2653_v38 = vld [vmem:[%s3255_s28 + $0x78] sm:$0xf0]  ;;  %v2643_v49 = vld [vmem:[%s3255_s28 + $0x60] sm:$0xf] }
 0x306   : > { %v2656_v39 = vor.u32 %v2797_v36, %v2653_v38  ;;  %v2905_v38 = vld [vmem:[%s3708_s5] ss:$0 sm:$0xff] }
 0x307   : > { %v2911_v51 = vpop.eup %2910  ;;  %v1452_v52 = vmul.f32 1.442695, %v1450_v50  ;;  %v2796_v50 = vld [vmem:[%s3255_s28 + $0x64] sm:$0xf0] }
 0x308   : > { %v1459_v53 = vsel %vm1443_vm5, %v2911_v51, 0.0  ;;  %1748 = vmatpush.bf16.msrb.mxu2 %v2656_v39 }
 0x309   : > { %2912 = vpow2.f32 %v1452_v52  ;;  %1460 = vadd.xlane.f32.xlu1 %v1459_v53  ;;  %v2644_v52 = vor.u32 %v2796_v50, %v2643_v49  ;;  %v2645_v53 = vld [vmem:[%s3255_s28 + $0x68] sm:$0xf0]  ;;  %v2803_v49 = vld [vmem:[%s3265_s25 + $0x20] sm:$0xff] }
 0x30a   : > { %v2812_v50 = vld [vmem:[%s3265_s25 + $0x68] sm:$0xff] }
 0x30b   : > { %1736 = vmatpush.bf16.msra.mxu1 %v2644_v52  ;;  %v2811_v52 = vld [vmem:[%s3265_s25 + $0x60] sm:$0xff] }
 0x30f   : > { %v2913_v56 = vpop.eup %2912 }
 0x310   : > { %v1456_v58 = vsel %vm1443_vm5, %v2913_v56, 0.0 }
 0x311   : > { %1457 = vadd.xlane.f32.xlu1 %v1456_v58  ;;  %v2793_v58 = vld [vmem:[%s3255_s28 + $0x54] sm:$0xf] }
 0x312   : > { %v2640_v61 = vor.u32 %v2793_v58, %v2637_v59  ;;  %v2799_v58 = vld [vmem:[%s3265_s25] sm:$0xff] }
 0x313   : > { %v1649_v59 = vld [vmem:[%s3260_s4] sm:$0x3] }
 0x314   : > { %v1651_v62 = vperm.slane %v1649_v59, 0  ;;  %v1652_v2 = vperm.slane %v1649_v59, 1 }
 0x37c   : > { %v1461_v5 = vpop.xlane.xlu1 %1460 }
 0x37d   : > { %2914 = vrcp.f32 %v1461_v5  ;;  %v2790_v5 = vld [vmem:[%s3255_s28 + $0x34] sm:$0xf0] }
 0x383   : > { %v2915_v6 = vpop.eup %2914 }
 0x384   : > { %v1465_v7 = vmul.f32 %v2915_v6, %v2911_v51  ;;  %v1458_v8 = vpop.xlane.xlu1 %1457  ;;  %v2795_v51 = vld [vmem:[%s3255_s28 + $0x64] sm:$0xf]  ;;  %v2789_v6 = vld [vmem:[%s3255_s28 + $0x34] sm:$0xf] }
 0x385   : > { %2916 = vrcp.f32 %v1458_v8  ;;  %v2648_v54 = vor.u32 %v2795_v51, %v2645_v53  ;;  %v2621_v8 = vld [vmem:[%s3255_s28 + $0x38] sm:$0xf0]  ;;  %v2801_v53 = vld [vmem:[%s3265_s25 + $0x10] sm:$0xff] }
 0x386   : > { %v1467_v9 = vpack.c.bf16 %v1465_v7, %v1465_v7  ;;  %2918 = vrcp.f32 %v3028_v33  ;;  %v2620_v7 = vor.u32 %v2790_v5, %v2619_v4  ;;  %v2802_v51 = vld [vmem:[%s3265_s25 + $0x18] sm:$0xff] }
 0x387   : > { %1749 = vmatpush.bf16.msrb.mxu2 %v2648_v54  ;;  %v2810_v54 = vld [vmem:[%s3265_s25 + $0x58] sm:$0xff] }
 0x388   : > { %2560 = vmatmul.msk.bf16.vlgmr.msra.gmra.mxu3 %vm1443_vm5, %v1467_v9  ;;  %v2624_v9 = vor.u32 %v2789_v6, %v2621_v8 }
 0x38b   : > { %v2917_v10 = vpop.eup %2916  ;;  %1750 = vmatpush.bf16.msrb.mxu2 %v2640_v61  ;;  %v2807_v61 = vld [vmem:[%s3265_s25 + $0x40] sm:$0xff] }
 0x38c   : > { %v1464_v11 = vmul.f32 %v2917_v10, %v2913_v56  ;;  %v2919_v40 = vpop.eup %2918  ;;  %v2635_v56 = vld [vmem:[%s3255_s28 + $0x50] sm:$0xf]  ;;  %v2611_v10 = vld [vmem:[%s3255_s28 + $0x20] sm:$0xf] }
 0x38d   : > { %v1600_v41 = vmul.f32 128.0, %v2919_v40  ;;  %vm1604_vm7 = vweird.f32 %v2919_v40  ;;  %v2636_v60 = vor.u32 %v2794_v57, %v2635_v56  ;;  %v2800_v56 = vld [vmem:[%s3265_s25 + $0x8] sm:$0xff]  ;;  %v2809_v57 = vld [vmem:[%s3265_s25 + $0x50] sm:$0xff] }
 0x38e   : > { %v1466_v12 = vpack.c.bf16 %v1464_v11, %v1464_v11  ;;  %v2788_v11 = vld [vmem:[%s3255_s28 + $0x24] sm:$0xf0] }
 0x38f   : > { %v1601_v42 = vsub.f32 1.0, %v1600_v41  ;;  %1737 = vmatpush.bf16.msra.mxu1 %v2636_v60  ;;  %1751 = vmatpush.bf16.msrb.mxu2 %v2632_v3  ;;  %v2612_v13 = vor.u32 %v2788_v11, %v2611_v10  ;;  %v2906_v41 = vld [vmem:[%s3710_s17] ss:$0 sm:$0xff]  ;;  %v2808_v60 = vld [vmem:[%s3265_s25 + $0x48] sm:$0xff] }
 0x390   : > { %2559 = vmatmul.msk.bf16.vlgmr.msra.gmra.mxu2 %vm1443_vm5, %v1466_v12  ;;  %v2787_v12 = vld [vmem:[%s3255_s28 + $0x24] sm:$0xf] }
 0x391   : > { %v2616_v15 = vor.u32 %v2787_v12, %v2613_v14 }
 0x393   : > { %1738 = vmatpush.bf16.msra.mxu1 %v2628_v1  ;;  %1752 = vmatpush.bf16.msrb.mxu2 %v2624_v9 }
 0x397   : > { %1739 = vmatpush.bf16.msra.mxu1 %v2620_v7  ;;  %1753 = vmatpush.bf16.msrb.mxu2 %v2616_v15 }
 0x39b   : > { %1740 = vmatpush.bf16.msra.mxu1 %v2612_v13 }
 0x39f   : > { %1741 = vmatpush.bf16.msra.mxu1 %v2604_v19 }
 0x40b   : > { %v1503_v18 = vpop.f32.mrf.mxu3 }
 0x40c   : > { %1508 = vrot.lane.b32.xlu2 %v1503_v18, %s3027_s16  ;;  %v2785_v18 = vld [vmem:[%s3255_s28 + $0x14] sm:$0xf] }
 0x413   : > { %v1484_v21 = vpop.f32.mrf.mxu2  ;;  %v1505_v22 = vpop.f32.mrf.mxu3 }
 0x414   : > { %v2595_v22 = vld [vmem:[%s3255_s28] sm:$0xf] }
 0x41b   : > { %v1486_v23 = vpop.f32.mrf.mxu2 }
 0x41c   : > { %v2784_v23 = vld [vmem:[%s3255_s28 + $0x4] sm:$0xf0] }
 0x466   : > { %v1509_v25 = vpop.permute.xlu2 %1508 }
 0x467   : > { %v1511_v26 = vsel %vm1397_vm4, %v1484_v21, %v1509_v25  ;;  %v2608_v21 = vor.u32 %v2785_v18, %v2605_v20  ;;  %v2596_v25 = vor.u32 %v2784_v23, %v2595_v22 }
 0x468   : > { %v1512_v27 = vpack.c.bf16 %v1511_v26, %v1511_v26  ;;  %v2597_v26 = vld [vmem:[%s3255_s28 + $0x8] sm:$0xf0] }
 0x469   : > { %1754 = vmatpush.bf16.msrb.mxu2 %v2608_v21  ;;  %1742 = vmatpush.bf16.msra.mxu1 %v2596_v25 }
 0x46a   : > { %1589 = vmatmul.bf16.vlgmr.msra.gmra.mxu0 %v1512_v27  ;;  %v2600_v27 = vor.u32 %v2783_v24, %v2597_v26  ;;  %v2907_v26 = vld [vmem:[%s841_s19] ss:$0 sm:$0xff] }
 0x46d   : > { %1755 = vmatpush.bf16.msrb.mxu2 %v2600_v27 }
 0x4e7   : > { %v1590_v29 = vpop.f32.mrf.mxu0 }
 0x4e8   : > { %v1591_v30 = vadd.f32 %v2904_v28, %v1590_v29  ;;  %v2806_v28 = vld [vmem:[%s3265_s25 + $0x38] sm:$0xff] }
 0x4e9   : > { %1913 = vmatpush.bf16.msrb.mxu3 %v2806_v28 }
 0x4ea   : > { %v1594_v31 = vadd.f32 %v1591_v30, %v3318_v55  ;;  %v1602_v55 = vmul.f32 %v2919_v40, %v1601_v42 }
 0x4ec   : > { %1597 = vadd.xlane.f32.xlu2 %v1594_v31  ;;  %v1603_v43 = vadd.f32 %v2919_v40, %v1602_v55 }
 0x4ee   : > { %v3390_v44 = vsel %vm1604_vm7, %v2919_v40, %v1603_v43 }
 0x4ef   : > { %v1592_v32 = vpop.f32.mrf.mxu0 }
 0x55f   : > { %v1598_v45 = vpop.xlane.xlu2 %1597 }
 0x560   : > { %v1606_v46 = vmul.f32 %v3390_v44, %v1598_v45  ;;  %v2805_v45 = vld [vmem:[%s3265_s25 + $0x30] sm:$0xff] }
 0x561   : > { %1914 = vmatpush.bf16.msrb.mxu3 %v2805_v45 }
 0x562   : > { %v3393_v47 = vsub.f32 %v1594_v31, %v1606_v46  ;;  %v2814_v46 = vld [vmem:[%s3265_s25 + $0x78] sm:$0xff] }
 0x563   : > { %1926 = vmatpush.bf16.msrb.mxu0 %v2814_v46 }
 0x564   : > { %v1608_v48 = vmul.f32 %v3393_v47, %v3393_v47 }
 0x566   : > { %1609 = vadd.xlane.f32.xlu0 %v1608_v48  ;;  %v2813_v48 = vld [vmem:[%s3265_s25 + $0x70] sm:$0xff] }
 0x567   : > { %1927 = vmatpush.bf16.msrb.mxu0 %v2813_v48 }
 0x56b   : > { %1928 = vmatpush.bf16.msrb.mxu0 %v2812_v50 }
 0x56f   : > { %1929 = vmatpush.bf16.msrb.mxu0 %v2811_v52 }
 0x573   : > { %1930 = vmatpush.bf16.msrb.mxu0 %v2810_v54 }
 0x577   : > { %1931 = vmatpush.bf16.msrb.mxu0 %v2809_v57 }
 0x57b   : > { %1932 = vmatpush.bf16.msrb.mxu0 %v2808_v60 }
 0x57f   : > { %1933 = vmatpush.bf16.msrb.mxu0 %v2807_v61 }
 0x5d9   : > { %v1610_v29 = vpop.xlane.xlu0 %1609 }
 0x5da   : > { %v1611_v30 = vmul.f32 %v1610_v29, %v3390_v44 }
 0x5dc   : > { %v1612_v31 = vadd.f32 1e-12, %v1611_v30 }
 0x5de   : > { %2920 = vrsqrt.f32 %v1612_v31  ;;  %vm1619_vm9 = vweird.f32 %v1612_v31 }
 0x5e4   : > { %v2921_v32 = vpop.eup %2920 }
 0x5e5   : > { %v1614_v33 = vmul.f32 %v2921_v32, %v1612_v31  ;;  %vm1620_vm8 = vweird.f32 %v2921_v32 }
 0x5e6   : > { %vm1621_vm10 = vmor %vm1619_vm9, %vm1620_vm8 }
 0x5e7   : > { %v1615_v34 = vmul.f32 %v2921_v32, %v1614_v33 }
 0x5e9   : > { %v1616_v35 = vmul.f32 0.5, %v1615_v34 }
 0x5eb   : > { %v1617_v36 = vsub.f32 1.5, %v1616_v35 }
 0x5ed   : > { %v1618_v37 = vmul.f32 %v2921_v32, %v1617_v36 }
 0x5ef   : > { %v1622_v39 = vsel %vm1621_vm10, %v2921_v32, %v1618_v37 }
 0x5f0   : > { %v1623_v40 = vmul.f32 %v1622_v39, %v3393_v47  ;;  %v2804_v47 = vld [vmem:[%s3265_s25 + $0x28] sm:$0xff] }
 0x5f1   : > { %1915 = vmatpush.bf16.msrb.mxu3 %v2804_v47  ;;  %v2908_v47 = vld [vmem:[%s844_s6] ss:$0 sm:$0xff] }
 0x5f2   : > { %v1627_v42 = vmul.f32 %v2905_v38, %v1623_v40 }
 0x5f4   : > { %v3438_v55 = vadd.f32 %v2906_v41, %v1627_v42 }
 0x5f5   : > { %1916 = vmatpush.bf16.msrb.mxu3 %v2803_v49 }
 0x5f6   : > { %v1632_v43 = vpack.c.bf16 %v3438_v55, %v3438_v55 }
 0x5f8   : > { %1743 = vmatmul.bf16.vlgmr.msra.gmra.mxu1 %v1632_v43  ;;  %1756 = vmatmul.bf16.vlgmr.msrb.gmra.mxu2 %v1632_v43 }
 0x5f9   : > { %1917 = vmatpush.bf16.msrb.mxu3 %v2802_v51 }
 0x5fd   : > { %1918 = vmatpush.bf16.msrb.mxu3 %v2801_v53 }
 0x601   : > { %1919 = vmatpush.bf16.msrb.mxu3 %v2800_v56 }
 0x605   : > { %1920 = vmatpush.bf16.msrb.mxu3 %v2799_v58 }
 0x675   : > { %v1744_v63 = vpop.f32.mrf.mxu1 }
 0x676   : > { %v1745_v0 = vadd.f32 %v1744_v63, %v1651_v62 }
 0x678   : > { %v1761_v1 = vmul.f32 %v1745_v0, %v1745_v0 }
 0x67a   : > { %v1763_v3 = vmul.f32 %v1761_v1, %v1745_v0 }
 0x67b   : > { %v1757_v4 = vpop.f32.mrf.mxu2 }
 0x67c   : > { %v1765_v5 = vmul.f32 0.044715, %v1763_v3  ;;  %v1758_v6 = vadd.f32 %v1757_v4, %v1652_v2 }
 0x67d   : > { %v1746_v7 = vpop.f32.mrf.mxu1 }
 0x67e   : > { %v1767_v8 = vadd.f32 %v1765_v5, %v1745_v0  ;;  %v1762_v9 = vmul.f32 %v1758_v6, %v1758_v6 }
 0x680   : > { %v1769_v10 = vmul.f32 0.7978846, %v1767_v8  ;;  %v1764_v11 = vmul.f32 %v1762_v9, %v1758_v6 }
 0x682   : > { %2922 = vtanh.f32 %v1769_v10  ;;  %v1766_v12 = vmul.f32 0.044715, %v1764_v11 }
 0x683   : > { %v1759_v13 = vpop.f32.mrf.mxu2 }
 0x684   : > { %v1768_v14 = vadd.f32 %v1766_v12, %v1758_v6 }
 0x686   : > { %v1770_v15 = vmul.f32 0.7978846, %v1768_v14 }
 0x688   : > { %v2923_v16 = vpop.eup %2922  ;;  %2924 = vtanh.f32 %v1770_v15 }
 0x689   : > { %v1773_v17 = vadd.f32 1.0, %v2923_v16 }
 0x68b   : > { %v1775_v18 = vmul.f32 0.5, %v1773_v17 }
 0x68d   : > { %v1777_v19 = vmul.f32 %v1775_v18, %v1745_v0 }
 0x68e   : > { %v2925_v20 = vpop.eup %2924 }
 0x68f   : > { %v1779_v21 = vpack.c.bf16 %v1777_v19, %v1777_v19  ;;  %v1774_v22 = vadd.f32 1.0, %v2925_v20 }
 0x691   : > { %1921 = vmatmul.bf16.vlgmr.msrb.gmra.mxu3 %v1779_v21  ;;  %v1776_v23 = vmul.f32 0.5, %v1774_v22 }
 0x693   : > { %v1778_v24 = vmul.f32 %v1776_v23, %v1758_v6 }
 0x695   : > { %v1780_v25 = vpack.c.bf16 %v1778_v24, %v1778_v24 }
 0x697   : > { %1934 = vmatmul.bf16.vlgmr.msrb.gmra.mxu0 %v1780_v25 }
 0x714   : > { %v1922_v27 = vpop.f32.mrf.mxu3  ;;  %v1935_v28 = vpop.f32.mrf.mxu0 }
 0x715   : > { %v1923_v29 = vadd.f32 %v2907_v26, %v1922_v27 }
 0x717   : > { %v1936_v30 = vadd.f32 %v1935_v28, %v1923_v29 }
 0x719   : > { %v1939_v31 = vadd.f32 %v1936_v30, %v3438_v55 }
 0x71b   : > { %1942 = vadd.xlane.f32.xlu1 %v1939_v31 }
 0x71c   : > { %v1924_v32 = vpop.f32.mrf.mxu3  ;;  %v1937_v33 = vpop.f32.mrf.mxu0 }
 0x78e   : > { %v1943_v34 = vpop.xlane.xlu1 %1942 }
 0x78f   : > { %v1944_v35 = vmul.f32 %v1943_v34, %v3390_v44 }
 0x791   : > { %v1945_v36 = vsub.f32 %v1939_v31, %v1944_v35 }
 0x793   : > { %v1946_v37 = vmul.f32 %v1945_v36, %v1945_v36 }
 0x795   : > { %1947 = vadd.xlane.f32.xlu0 %v1946_v37 }
 0x808   : > { %v1948_v38 = vpop.xlane.xlu0 %1947 }
 0x809   : > { %v1949_v39 = vmul.f32 %v1948_v38, %v3390_v44  ;;  %v2909_v44 = vld [vmem:[%s847_s9] ss:$0 sm:$0xff] }
 0x80b   : > { %v1950_v40 = vadd.f32 1e-12, %v1949_v39 }
 0x80d   : > { %2926 = vrsqrt.f32 %v1950_v40  ;;  %vm1957_vm12 = vweird.f32 %v1950_v40 }
 0x813   : > { %v2927_v41 = vpop.eup %2926 }
 0x814   : > { %v1952_v42 = vmul.f32 %v2927_v41, %v1950_v40  ;;  %vm1958_vm11 = vweird.f32 %v2927_v41 }
 0x815   : > { %vm1959_vm13 = vmor %vm1957_vm12, %vm1958_vm11 }
 0x816   : > { %v1953_v43 = vmul.f32 %v2927_v41, %v1952_v42 }
 0x818   : > { %v1954_v55 = vmul.f32 0.5, %v1953_v43 }
 0x81a   : > { %v1955_v45 = vsub.f32 1.5, %v1954_v55 }
 0x81c   : > { %v1956_v46 = vmul.f32 %v2927_v41, %v1955_v45 }
 0x81e   : > { %v1960_v48 = vsel %vm1959_vm13, %v2927_v41, %v1956_v46 }
 0x81f   : > { %v1961_v49 = vmul.f32 %v1960_v48, %v1945_v36 }
 0x821   : > { %v1965_v50 = vmul.f32 %v2908_v47, %v1961_v49  ;;  %1974 = sbr.rel (%p2721_p1) target bundleno = 2382 (0x94e), region = 108 }
 0x823   : > { %v1969_v51 = vadd.f32 %v2909_v44, %v1965_v50 }
 0x825   : > { %1970 = vst [vmem:[#allocation2] sm:$0xff] %v1969_v51 }
 0x826   : > { %v1990_v52 = vld [vmem:[%s3713_s1 + $0x78] sm:$0xff]  ;;  %v1989_v53 = vld [vmem:[%s3714_s20 + $0x70] sm:$0xff]  ;;  %v1988_v54 = vld [vmem:[%s3714_s20 + $0x68] sm:$0xff] }
 0x827   : > { %1992 = vmatpush.msra.mxu0 %v1990_v52  ;;  %v1987_v56 = vld [vmem:[%s3714_s20 + $0x60] sm:$0xff]  ;;  %v2028_v57 = vld [vmem:[%s3715_s26 + $0x78] sm:$0xff]  ;;  %v2027_v58 = vld [vmem:[%s3716_s27 + $0x70] sm:$0xff] }
 0x828   : > { %v1986_v60 = vld [vmem:[%s3714_s20 + $0x58] sm:$0xff]  ;;  %2030 = vmatpush.msra.mxu1 %v2028_v57  ;;  %v2026_v59 = vld [vmem:[%s3716_s27 + $0x68] sm:$0xff]  ;;  %v1985_v61 = vld [vmem:[%s3714_s20 + $0x50] sm:$0xff] }
 0x829   : > { %1993 = vmatpush.msra.mxu0 %v1989_v53  ;;  %v2025_v62 = vld [vmem:[%s3716_s27 + $0x60] sm:$0xff]  ;;  %v1984_v63 = vld [vmem:[%s3714_s20 + $0x48] sm:$0xff]  ;;  %v2024_v0 = vld [vmem:[%s3716_s27 + $0x58] sm:$0xff] }
 0x82a   : > { %2031 = vmatpush.msra.mxu1 %v2027_v58  ;;  %v1983_v1 = vld [vmem:[%s3714_s20 + $0x40] sm:$0xff]  ;;  %v2023_v2 = vld [vmem:[%s3716_s27 + $0x50] sm:$0xff]  ;;  %v1982_v3 = vld [vmem:[%s3714_s20 + $0x38] sm:$0xff] }
 0x82b   : > { %1994 = vmatpush.msra.mxu0 %v1988_v54  ;;  %v2022_v4 = vld [vmem:[%s3716_s27 + $0x48] sm:$0xff]  ;;  %v1981_v5 = vld [vmem:[%s3714_s20 + $0x30] sm:$0xff]  ;;  %v2021_v6 = vld [vmem:[%s3716_s27 + $0x40] sm:$0xff] }
 0x82c   : > { %2032 = vmatpush.msra.mxu1 %v2026_v59  ;;  %v1980_v7 = vld [vmem:[%s3714_s20 + $0x28] sm:$0xff]  ;;  %v2020_v8 = vld [vmem:[%s3716_s27 + $0x38] sm:$0xff]  ;;  %v1979_v9 = vld [vmem:[%s3714_s20 + $0x20] sm:$0xff] }
 0x82d   : > { %1995 = vmatpush.msra.mxu0 %v1987_v56  ;;  %v2019_v10 = vld [vmem:[%s3716_s27 + $0x30] sm:$0xff]  ;;  %v1978_v11 = vld [vmem:[%s3714_s20 + $0x18] sm:$0xff]  ;;  %v2018_v12 = vld [vmem:[%s3716_s27 + $0x28] sm:$0xff] }
 0x82e   : > { %2033 = vmatpush.msra.mxu1 %v2025_v62  ;;  %v1977_v13 = vld [vmem:[%s3714_s20 + $0x10] sm:$0xff]  ;;  %v1976_v14 = vld [vmem:[%s3714_s20 + $0x8] sm:$0xff]  ;;  %v1975_v15 = vld [vmem:[%s3714_s20] sm:$0xff] }
 0x82f   : > { %1996 = vmatpush.msra.mxu0 %v1986_v60  ;;  %v2017_v16 = vld [vmem:[%s3716_s27 + $0x20] sm:$0xff]  ;;  %v2016_v17 = vld [vmem:[%s3716_s27 + $0x18] sm:$0xff]  ;;  %v2015_v18 = vld [vmem:[%s3716_s27 + $0x10] sm:$0xff] }
 0x830   : > { %2034 = vmatpush.msra.mxu1 %v2024_v0  ;;  %v2014_v19 = vld [vmem:[%s3716_s27 + $0x8] sm:$0xff]  ;;  %v2013_v20 = vld [vmem:[%s3716_s27] sm:$0xff] }
 0x831   : > { %1997 = vmatpush.msra.mxu0 %v1985_v61  ;;  %v1991_v21 = vld [vmem:[%s3717_s29] sm:$0x1] }
 0x832   : > { %2035 = vmatpush.msra.mxu1 %v2023_v2  ;;  %v2029_v25 = vld [vmem:[%s3718_s0] sm:$0x1] }
 0x833   : > { %1998 = vmatpush.msra.mxu0 %v1984_v63 }
 0x834   : > { %2036 = vmatpush.msra.mxu1 %v2022_v4 }
 0x835   : > { %1999 = vmatpush.msra.mxu0 %v1983_v1 }
 0x836   : > { %2037 = vmatpush.msra.mxu1 %v2021_v6 }
 0x837   : > { %2000 = vmatpush.msra.mxu0 %v1982_v3 }
 0x838   : > { %2038 = vmatpush.msra.mxu1 %v2020_v8 }
 0x839   : > { %2001 = vmatpush.msra.mxu0 %v1981_v5 }
 0x83a   : > { %2039 = vmatpush.msra.mxu1 %v2019_v10 }
 0x83b   : > { %2002 = vmatpush.msra.mxu0 %v1980_v7 }
 0x83c   : > { %2040 = vmatpush.msra.mxu1 %v2018_v12 }
 0x83d   : > { %2003 = vmatpush.msra.mxu0 %v1979_v9 }
 0x83e   : > { %2041 = vmatpush.msra.mxu1 %v2017_v16 }
 0x83f   : > { %2004 = vmatpush.msra.mxu0 %v1978_v11 }
 0x840   : > { %2042 = vmatpush.msra.mxu1 %v2016_v17 }
 0x841   : > { %2005 = vmatpush.msra.mxu0 %v1977_v13 }
 0x842   : > { %2043 = vmatpush.msra.mxu1 %v2015_v18 }
 0x843   : > { %2006 = vmatpush.msra.mxu0 %v1976_v14 }
 0x844   : > { %2044 = vmatpush.msra.mxu1 %v2014_v19 }
 0x845   : > { %2007 = vmatpush.msra.mxu0 %v1975_v15 }
 0x846   : > { %2008 = vmatmul.f32.vlgmr.msra.gmra.mxu0 %v1969_v51  ;;  %2045 = vmatpush.msra.mxu1 %v2013_v20 }
 0x8c3   : > { %v2009_v22 = vpop.f32.mrf.mxu0 }
 0x8c4   : > { %v2010_v23 = vadd.f32 %v2009_v22, %v1991_v21 }
 0x8c6   : > { %2928 = vtanh.f32 %v2010_v23 }
 0x8cc   : > { %v2929_v24 = vpop.eup %2928 }
 0x8cd   : > { %2046 = vmatmul.f32.vlgmr.msra.gmra.mxu1 %v2929_v24 }
 0x94a   : > { %v2047_v26 = vpop.f32.mrf.mxu1 }
 0x94b   : > { %v2048_v27 = vadd.f32 %v2047_v26, %v2029_v25 }
 0x94d   : > { %2050 = vst [vmem:[%s3281_s24] sm:$0x1] %v2048_v27 }
 0x94e PF: > { %s3719_s5 = sld [smem:[#allocation9_spill]]  ;;  %s2062_s19 = sshll.u32 %s3281_s24, 4  ;;  %s2063_s19 = int_to_ptr.vmem [resolvable:$true] %s2062_s19 }
 0x94f   : > { %s3720_s17 = sld [smem:[#allocation33_spill]]  ;;  %s3722_s15 = sand.u32 1, %s3000_s22  }
 0x950   : > { %s2052_s21 = scalar_lea.sflag [#allocation4], %s3722_s15 }
 0x955   : > { %s2060_s25 = scalar_lea.hbm %s3720_s17, %s3719_s5  ;;  %s2950_s1 = scalar_lea.hbm %s3720_s17, 2 }
 0x956   : > { %s2064_s30 = sshll.u32 %s2060_s25, 4  ;;  %s2065_s30 = int_to_ptr.hbm [resolvable:$true] %s2064_s30 }
 0x957   : > { %s2944_s3 = sshra.s32 %s2065_s30, 4  ;;  %s2945_s3 = int_to_ptr.hbm [resolvable:$true] %s2944_s3 }
 0x958   : > { %s2946_s18 = scalar_lea.hbm %s2945_s3, 1  ;;  %p2951_p6 = scmp.lt.s32.totalorder %s2945_s3, %s3720_s17 }
 0x959   : > { %p2947_p2 = scmp.ne.s32.totalorder %s2945_s3, %s2946_s18  ;;  %p2952_p7 = scmp.lt.s32.totalorder %s2950_s1, %s2946_s18 }
 0x95b   : > { %p2948_p4 = pnand %p2947_p2, %p3183_p3  ;;  %p2953_p8 = por %p2952_p7, %p2951_p6 }
 0x95d   : > { %p2949_p5 = pneg %p2948_p4 }
 0x95f   : > { %p2954_p10 = pnand %p2953_p8, %p2949_p5 }
 0x961   : > { %2957 = shalt.err (!%p2954_p10)
}
 0x962   : > { %2817 = dma.vmem_to_hbm [thread:$0]  (%p3183_p3), %s2063_s19, 16, %s2065_s30, %s2052_s21  }
 0x963 PF: > { %s3723_s24 = sld [smem:[#allocation12_spill]] }
 0x964   : > { %s3724_s29 = sld [smem:[#allocation6_spill]] }
 0x969   : > { %p2823_p11 = scmp.ge.s32.totalorder %s3723_s24, 2 }
 0x96a   : > { %s2076_s9 = sand.u32 1, %s3724_s29  }
 0x96b   : > { %p2820_p12 = pnand %p2823_p11, %p3193_p9  ;;  %s2077_s0 = scalar_lea.sflag [#allocation4], %s2076_s9 }
 0x96d   : > { %p2821_p13 = pneg %p2820_p12 }
 0x96f   : > { %2991 = dma.done.wait (%p2821_p13), %s2077_s0, 16  }
 0x970   : > { %2993 = vsyncadd (%p2821_p13), %s2077_s0, 4294967280  ;;  %s33_s26 = sadd.s32 1, %s3723_s24   ;;  %s3726_s5 = sld [smem:[#allocation7_spill]] }
 0x971   : > { %p30_p0 = scmp.ge.s32.totalorder %s33_s26, 6   ;;  %s3727_s23 = sld [smem:[#allocation17_spill]] }
 0x972   : > { %s3728_s24 = sld [smem:[#allocation10_spill]]  ;;  %s3732_s1 = smov %s3000_s22 }
 0x973   : > { %s3729_s2 = sld [smem:[#allocation11_spill]]  ;;  %32 = sbr.rel (!%p30_p0) target bundleno = 21 (0x15), region = 192 }
 0x974   : > { %s3730_s25 = sld [smem:[#allocation13_spill]] }
 0x975   : > { %s3731_s3 = sld [smem:[#allocation15_spill]] }
 0x976   : > { %s3733_s22 = smov %s3726_s5 }
 0x978   :  { %2082 = vsyncpa [#allocation4], 1 }
 0x979   :  { %2084 = vsyncpa [#allocation4 + $0x1], 1 }

</bundles_post_ra>
